<compile_context>
chip_gen: v7x
topology: tpu7x:2x2x1
jax: 0.10.0
libtpu: 0.0.40
codegen_flags: <defaults>
</compile_context>

<pallas_src>
import math
from functools import partial

import jax
import jax.numpy as jnp
from jax.experimental import pallas as pl
from jax.experimental.pallas import tpu as pltpu

# ------------------------- synthetic BERT config -------------------------
HIDDEN = 32
N_HEADS = 2
HEAD_DIM = HIDDEN // N_HEADS
INTERMEDIATE = 64
N_LAYERS = 2
VOCAB = 128
MAX_POS = 64
TYPE_VOCAB = 2
LN_EPS = 1e-12


# ------------------------- in-kernel helpers -------------------------
def _layernorm(x, g, b):
    mu = jnp.mean(x, axis=-1, keepdims=True)
    xc = x - mu
    var = jnp.mean(xc * xc, axis=-1, keepdims=True)
    return xc * jax.lax.rsqrt(var + LN_EPS) * g + b


def _gelu(x):
    # TODO(synk): exact BERT uses erf-GELU; tanh approximation keeps the EUP lowering path.
    c = math.sqrt(2.0 / math.pi)
    return 0.5 * x * (1.0 + jnp.tanh(c * (x + 0.044715 * x * x * x)))


# ------------------------- fused forward kernel -------------------------
def _bert_fused_kernel(emb_ref, mask_ref,
                       emb_g_ref, emb_b_ref,
                       qkv_w_ref, qkv_b_ref, o_w_ref, o_b_ref,
                       ln1_g_ref, ln1_b_ref,
                       ffn1_w_ref, ffn1_b_ref, ffn2_w_ref, ffn2_b_ref,
                       ln2_g_ref, ln2_b_ref,
                       cls_w_ref, cls_b_ref,
                       *rest, compute_loss, inv_tokens, bt, seq):
    if compute_loss:
        y_ref, out_ref = rest
    else:
        (out_ref,) = rest

    T = bt * seq  # tokens handled by this grid step

    # Embedding LayerNorm over all tokens of the step (word+pos+type sum built outside).
    h = _layernorm(emb_ref[...], emb_g_ref[...], emb_b_ref[...])          # (T, HIDDEN) f32

    mask_bias = mask_ref[...]                                             # (bt, 1, S) additive

    for l in range(N_LAYERS):
        # --- fused QKV projection for every token (bf16 MXU inputs, f32 acc) ---
        qkv = jnp.dot(h.astype(jnp.bfloat16), qkv_w_ref[l],
                      preferred_element_type=jnp.float32) + qkv_b_ref[l]  # (T, 3H)
        qkv3 = qkv.reshape(bt, seq, 3 * HIDDEN)

        # --- multi-head self-attention, batched over the bt rows ---
        ctx_heads = []
        for hd in range(N_HEADS):
            lo = hd * HEAD_DIM
            q_h = qkv3[:, :, lo:lo + HEAD_DIM].astype(jnp.bfloat16)                       # (bt,S,D)
            k_h = qkv3[:, :, HIDDEN + lo:HIDDEN + lo + HEAD_DIM].astype(jnp.bfloat16)     # (bt,S,D)
            v_h = qkv3[:, :, 2 * HIDDEN + lo:2 * HIDDEN + lo + HEAD_DIM].astype(jnp.bfloat16)

            # 1/sqrt(HEAD_DIM) is folded into the packed Q weights (pack time).
            scores = jnp.einsum('bqd,bkd->bqk', q_h, k_h,
                                preferred_element_type=jnp.float32) + mask_bias           # (bt,S,S)
            smax = jnp.max(scores, axis=-1, keepdims=True)
            e = jnp.exp(scores - smax)
            p = e * pl.reciprocal(jnp.sum(e, axis=-1, keepdims=True), approx=True)
            ctx_heads.append(jnp.einsum('bqk,bkd->bqd', p.astype(jnp.bfloat16), v_h,
                                        preferred_element_type=jnp.float32))              # (bt,S,D)

        ctx = jnp.concatenate(ctx_heads, axis=-1).reshape(T, HIDDEN)                      # (T, H)
        attn = jnp.dot(ctx.astype(jnp.bfloat16), o_w_ref[l],
                       preferred_element_type=jnp.float32) + o_b_ref[l]                   # (T, H)

        # residual + LayerNorm 1 (in-register)
        h = _layernorm(h + attn, ln1_g_ref[l], ln1_b_ref[l])

        # --- feed-forward ---
        ff = jnp.dot(h.astype(jnp.bfloat16), ffn1_w_ref[l],
                     preferred_element_type=jnp.float32) + ffn1_b_ref[l]                  # (T, INTER)
        ff = _gelu(ff)
        ff = jnp.dot(ff.astype(jnp.bfloat16), ffn2_w_ref[l],
                     preferred_element_type=jnp.float32) + ffn2_b_ref[l]                  # (T, H)

        # residual + LayerNorm 2
        h = _layernorm(h + ff, ln2_g_ref[l], ln2_b_ref[l])

    # --- classifier head (lane-dense: VOCAB = 128) ---
    logits = jnp.dot(h.astype(jnp.bfloat16), cls_w_ref[...],
                     preferred_element_type=jnp.float32) + cls_b_ref[...]                 # (T, VOCAB)

    if compute_loss:
        y = y_ref[...]                                                                    # (T, 1) int32
        m = jnp.max(logits, axis=-1, keepdims=True)
        lse = jnp.log(jnp.sum(jnp.exp(logits - m), axis=-1, keepdims=True)) + m
        col = jax.lax.broadcasted_iota(jnp.int32, logits.shape, 1)
        picked = jnp.sum(jnp.where(col == y, logits, 0.0), axis=-1, keepdims=True)
        partial_sum = jnp.sum(lse - picked, axis=0, keepdims=True)                        # (1, 1)

        g = pl.program_id(0)

        @pl.when(g == 0)
        def _():
            out_ref[...] = jnp.zeros_like(out_ref)

        out_ref[...] += partial_sum

        @pl.when(g == pl.num_programs(0) - 1)
        def _():
            out_ref[...] = out_ref[...] * inv_tokens                                      # mean over B*S
    else:
        m = jnp.max(logits, axis=-1, keepdims=True)
        e = jnp.exp(logits - m)
        out_ref[...] = e / jnp.sum(e, axis=-1, keepdims=True)                             # exact softmax


# ------------------------- parameters (deterministic synthetic) -------------------------
def init_params(key):
    def dense(k, fan_in, fan_out):
        kw, _ = jax.random.split(k)
        return {"w": jax.random.normal(kw, (fan_in, fan_out), jnp.float32) * 0.02,
                "b": jnp.zeros((fan_out,), jnp.float32)}

    keys = jax.random.split(key, 4 + N_LAYERS)
    params = {
        "word_emb": jax.random.normal(keys[0], (VOCAB, HIDDEN), jnp.float32) * 0.02,
        "pos_emb": jax.random.normal(keys[1], (MAX_POS, HIDDEN), jnp.float32) * 0.02,
        "type_emb": jax.random.normal(keys[2], (TYPE_VOCAB, HIDDEN), jnp.float32) * 0.02,
        "emb_ln_g": jnp.ones((HIDDEN,), jnp.float32),
        "emb_ln_b": jnp.zeros((HIDDEN,), jnp.float32),
        "classify": dense(keys[3], HIDDEN, VOCAB),
        "layers": [],
    }
    for l in range(N_LAYERS):
        lk = jax.random.split(keys[4 + l], 6)
        params["layers"].append({
            "q": dense(lk[0], HIDDEN, HIDDEN),
            "k": dense(lk[1], HIDDEN, HIDDEN),
            "v": dense(lk[2], HIDDEN, HIDDEN),
            "o": dense(lk[3], HIDDEN, HIDDEN),
            "ffn1": dense(lk[4], HIDDEN, INTERMEDIATE),
            "ffn2": dense(lk[5], INTERMEDIATE, HIDDEN),
            "ln1_g": jnp.ones((HIDDEN,), jnp.float32),
            "ln1_b": jnp.zeros((HIDDEN,), jnp.float32),
            "ln2_g": jnp.ones((HIDDEN,), jnp.float32),
            "ln2_b": jnp.zeros((HIDDEN,), jnp.float32),
        })
    return params


def pack_params(params):
    """One-time packing: stack per-layer weights, concat QKV (with 1/sqrt(D) folded
    into the Q columns), pre-shape biases, cast all MXU weights to bf16."""
    layers = params["layers"]
    scale = 1.0 / math.sqrt(HEAD_DIM)
    stack = lambda f: jnp.stack([f(l) for l in layers], axis=0)
    return {
        "word_emb": params["word_emb"],
        "pos_emb": params["pos_emb"],
        "type_emb": params["type_emb"],
        "emb_g": params["emb_ln_g"].reshape(1, HIDDEN),
        "emb_b": params["emb_ln_b"].reshape(1, HIDDEN),
        "qkv_w": stack(lambda l: jnp.concatenate(
            [l["q"]["w"] * scale, l["k"]["w"], l["v"]["w"]], axis=1)).astype(jnp.bfloat16),
        "qkv_b": stack(lambda l: jnp.concatenate(
            [l["q"]["b"] * scale, l["k"]["b"], l["v"]["b"]], axis=0).reshape(1, 3 * HIDDEN)),
        "o_w": stack(lambda l: l["o"]["w"]).astype(jnp.bfloat16),
        "o_b": stack(lambda l: l["o"]["b"].reshape(1, HIDDEN)),
        "ln1_g": stack(lambda l: l["ln1_g"].reshape(1, HIDDEN)),
        "ln1_b": stack(lambda l: l["ln1_b"].reshape(1, HIDDEN)),
        "ffn1_w": stack(lambda l: l["ffn1"]["w"]).astype(jnp.bfloat16),
        "ffn1_b": stack(lambda l: l["ffn1"]["b"].reshape(1, INTERMEDIATE)),
        "ffn2_w": stack(lambda l: l["ffn2"]["w"]).astype(jnp.bfloat16),
        "ffn2_b": stack(lambda l: l["ffn2"]["b"].reshape(1, HIDDEN)),
        "ln2_g": stack(lambda l: l["ln2_g"].reshape(1, HIDDEN)),
        "ln2_b": stack(lambda l: l["ln2_b"].reshape(1, HIDDEN)),
        "cls_w": params["classify"]["w"].astype(jnp.bfloat16),
        "cls_b": params["classify"]["b"].reshape(1, VOCAB),
    }


def _pick_bt(B, S, max_tokens=512):
    """Largest batch-tile bt such that B % bt == 0, bt*S tokens are sublane-aligned
    and the per-step token count stays modest (VMEM-friendly)."""
    cap = max(1, min(B, max_tokens // max(S, 1)))
    for bt in range(cap, 0, -1):
        if B % bt == 0 and (bt * S) % 8 == 0:
            return bt
    return B  # single step: block dim equals the full array dim -> always legal


# ------------------------- forward (mirrors BertQA_Model.forward) -------------------------
def bert_qa_forward(packed, input_ids, attention_mask=None, y=None):
    B, S = input_ids.shape
    if attention_mask is None:
        attention_mask = jnp.ones((B, S), jnp.float32)

    # Glue outside the kernel: embedding-table row gather + additive mask bias.
    # TODO(synk): dynamic row gather has no efficient Pallas equivalent at this size.
    emb = (packed["word_emb"][input_ids]
           + packed["pos_emb"][:S][None, :, :]
           + packed["type_emb"][0][None, None, :]).astype(jnp.float32)
    emb = emb.reshape(B * S, HIDDEN)                                       # flat token matrix
    mask_bias = ((attention_mask.astype(jnp.float32) - 1.0) * 1e9).reshape(B, 1, S)

    bt = _pick_bt(B, S)
    T = bt * S
    grid = (B // bt,)

    def full_spec(arr):
        nd = arr.ndim
        return pl.BlockSpec(arr.shape, lambda g, _nd=nd: (0,) * _nd)

    weight_names = ["emb_g", "emb_b", "qkv_w", "qkv_b", "o_w", "o_b",
                    "ln1_g", "ln1_b", "ffn1_w", "ffn1_b", "ffn2_w", "ffn2_b",
                    "ln2_g", "ln2_b", "cls_w", "cls_b"]
    weights = [packed[n] for n in weight_names]

    inputs = [emb, mask_bias] + weights
    in_specs = [pl.BlockSpec((T, HIDDEN), lambda g: (g, 0)),
                pl.BlockSpec((bt, 1, S), lambda g: (g, 0, 0))] \
        + [full_spec(w) for w in weights]

    compute_loss = y is not None
    if compute_loss:
        inputs.append(y.reshape(B * S, 1).astype(jnp.int32))
        in_specs.append(pl.BlockSpec((T, 1), lambda g: (g, 0)))
        out_shape = jax.ShapeDtypeStruct((1, 1), jnp.float32)
        out_specs = pl.BlockSpec((1, 1), lambda g: (0, 0))        # resident accumulator
        semantics = ("arbitrary",)
    else:
        out_shape = jax.ShapeDtypeStruct((B * S, VOCAB), jnp.float32)
        out_specs = pl.BlockSpec((T, VOCAB), lambda g: (g, 0))    # lane-dense (·, 128) slab
        semantics = ("parallel",)

    kernel = partial(_bert_fused_kernel, compute_loss=compute_loss,
                     inv_tokens=1.0 / float(B * S), bt=bt, seq=S)

    out = pl.pallas_call(
        kernel,
        out_shape=out_shape,
        grid=grid,
        in_specs=in_specs,
        out_specs=out_specs,
        compiler_params=pltpu.CompilerParams(dimension_semantics=semantics),
    )(*inputs)

    if compute_loss:
        return out[0, 0]
    return out.reshape(B, S, VOCAB)                               # (B, S, VOCAB) probabilities


if __name__ == "__main__":
    key = jax.random.PRNGKey(0)
    pkey, ikey, ykey = jax.random.split(key, 3)
    params = init_params(pkey)
    packed = pack_params(params)                                  # pack weights once

    B, S = 2, 8
    input_ids = jax.random.randint(ikey, (B, S), 0, VOCAB, dtype=jnp.int32)
    attention_mask = jnp.ones((B, S), jnp.float32).at[1, 6:].set(0.0)
    y = jax.random.randint(ykey, (B, S), 0, VOCAB, dtype=jnp.int32)

    probs = bert_qa_forward(packed, input_ids, attention_mask)          # inference path
    loss = bert_qa_forward(packed, input_ids, attention_mask, y=y)      # training path
    jax.block_until_ready((probs, loss))

    assert probs.shape == (B, S, VOCAB)
    assert bool(jnp.all(jnp.isfinite(probs))) and bool(jnp.isfinite(loss))
    assert bool(jnp.allclose(jnp.sum(probs, axis=-1), 1.0, atol=1e-4))
    print("KERNEL_OK")
</pallas_src>

<mosaic_0001>
module attributes {stable_mosaic.version = 11 : i64} {
  func.func @_bert_fused_kernel(%arg0: i32, %arg1: memref<16x32xf32, #tpu.memory_space<vmem>>, %arg2: memref<2x1x8xf32, #tpu.memory_space<vmem>>, %arg3: memref<1x32xf32, #tpu.memory_space<vmem>>, %arg4: memref<1x32xf32, #tpu.memory_space<vmem>>, %arg5: memref<2x32x96xbf16, #tpu.memory_space<vmem>>, %arg6: memref<2x1x96xf32, #tpu.memory_space<vmem>>, %arg7: memref<2x32x32xbf16, #tpu.memory_space<vmem>>, %arg8: memref<2x1x32xf32, #tpu.memory_space<vmem>>, %arg9: memref<2x1x32xf32, #tpu.memory_space<vmem>>, %arg10: memref<2x1x32xf32, #tpu.memory_space<vmem>>, %arg11: memref<2x32x64xbf16, #tpu.memory_space<vmem>>, %arg12: memref<2x1x64xf32, #tpu.memory_space<vmem>>, %arg13: memref<2x64x32xbf16, #tpu.memory_space<vmem>>, %arg14: memref<2x1x32xf32, #tpu.memory_space<vmem>>, %arg15: memref<2x1x32xf32, #tpu.memory_space<vmem>>, %arg16: memref<2x1x32xf32, #tpu.memory_space<vmem>>, %arg17: memref<32x128xbf16, #tpu.memory_space<vmem>>, %arg18: memref<1x128xf32, #tpu.memory_space<vmem>>, %arg19: memref<16x128xf32, #tpu.memory_space<vmem>>) attributes {dimension_semantics = [#tpu.dimension_semantics<parallel>], iteration_bounds = array<i64: 1>, scalar_prefetch = 0 : i64, scratch_operands = 0 : i64, tpu.core_type = #tpu.core_type<tc>, window_params = [{transform_indices = @transform_0, window_bounds = array<i64: 16, 32>}, {transform_indices = @transform_1, window_bounds = array<i64: 2, 1, 8>}, {pipeline_mode = #tpu.pipeline_mode<synchronous>, transform_indices = @transform_2, window_bounds = array<i64: 1, 32>}, {pipeline_mode = #tpu.pipeline_mode<synchronous>, transform_indices = @transform_3, window_bounds = array<i64: 1, 32>}, {pipeline_mode = #tpu.pipeline_mode<synchronous>, transform_indices = @transform_4, window_bounds = array<i64: 2, 32, 96>}, {pipeline_mode = #tpu.pipeline_mode<synchronous>, transform_indices = @transform_5, window_bounds = array<i64: 2, 1, 96>}, {pipeline_mode = #tpu.pipeline_mode<synchronous>, transform_indices = @transform_6, window_bounds = array<i64: 2, 32, 32>}, {pipeline_mode = #tpu.pipeline_mode<synchronous>, transform_indices = @transform_7, window_bounds = array<i64: 2, 1, 32>}, {pipeline_mode = #tpu.pipeline_mode<synchronous>, transform_indices = @transform_8, window_bounds = array<i64: 2, 1, 32>}, {pipeline_mode = #tpu.pipeline_mode<synchronous>, transform_indices = @transform_9, window_bounds = array<i64: 2, 1, 32>}, {pipeline_mode = #tpu.pipeline_mode<synchronous>, transform_indices = @transform_10, window_bounds = array<i64: 2, 32, 64>}, {pipeline_mode = #tpu.pipeline_mode<synchronous>, transform_indices = @transform_11, window_bounds = array<i64: 2, 1, 64>}, {pipeline_mode = #tpu.pipeline_mode<synchronous>, transform_indices = @transform_12, window_bounds = array<i64: 2, 64, 32>}, {pipeline_mode = #tpu.pipeline_mode<synchronous>, transform_indices = @transform_13, window_bounds = array<i64: 2, 1, 32>}, {pipeline_mode = #tpu.pipeline_mode<synchronous>, transform_indices = @transform_14, window_bounds = array<i64: 2, 1, 32>}, {pipeline_mode = #tpu.pipeline_mode<synchronous>, transform_indices = @transform_15, window_bounds = array<i64: 2, 1, 32>}, {pipeline_mode = #tpu.pipeline_mode<synchronous>, transform_indices = @transform_16, window_bounds = array<i64: 32, 128>}, {pipeline_mode = #tpu.pipeline_mode<synchronous>, transform_indices = @transform_17, window_bounds = array<i64: 1, 128>}, {transform_indices = @transform_18, window_bounds = array<i64: 16, 128>}]} {
    %c0 = arith.constant 0 : index
    %c0_0 = arith.constant 0 : index
    %0 = vector.load %arg1[%c0, %c0_0] : memref<16x32xf32, #tpu.memory_space<vmem>>, vector<16x32xf32>
    %c0_1 = arith.constant 0 : index
    %c0_2 = arith.constant 0 : index
    %1 = vector.load %arg3[%c0_1, %c0_2] : memref<1x32xf32, #tpu.memory_space<vmem>>, vector<1x32xf32>
    %c0_3 = arith.constant 0 : index
    %c0_4 = arith.constant 0 : index
    %2 = vector.load %arg4[%c0_3, %c0_4] : memref<1x32xf32, #tpu.memory_space<vmem>>, vector<1x32xf32>
    %cst = arith.constant dense<0.000000e+00> : vector<16xf32>
    %3 = vector.multi_reduction <add>, %0, %cst [1] : vector<16x32xf32> to vector<16xf32>
    %4 = vector.shape_cast %3 : vector<16xf32> to vector<16x1xf32>
    %cst_5 = arith.constant 3.200000e+01 : f32
    %5 = vector.broadcast %cst_5 : f32 to vector<16x1xf32>
    %6 = arith.divf %4, %5 : vector<16x1xf32>
    %7 = vector.broadcast %6 : vector<16x1xf32> to vector<16x32xf32>
    %8 = arith.subf %0, %7 : vector<16x32xf32>
    %9 = arith.mulf %8, %8 : vector<16x32xf32>
    %cst_6 = arith.constant dense<0.000000e+00> : vector<16xf32>
    %10 = vector.multi_reduction <add>, %9, %cst_6 [1] : vector<16x32xf32> to vector<16xf32>
    %11 = vector.shape_cast %10 : vector<16xf32> to vector<16x1xf32>
    %cst_7 = arith.constant 3.200000e+01 : f32
    %12 = vector.broadcast %cst_7 : f32 to vector<16x1xf32>
    %13 = arith.divf %11, %12 : vector<16x1xf32>
    %cst_8 = arith.constant 9.99999996E-13 : f32
    %14 = vector.broadcast %cst_8 : f32 to vector<16x1xf32>
    %15 = arith.addf %13, %14 : vector<16x1xf32>
    %16 = math.rsqrt %15 : vector<16x1xf32>
    %17 = vector.broadcast %16 : vector<16x1xf32> to vector<16x32xf32>
    %18 = arith.mulf %8, %17 : vector<16x32xf32>
    %19 = vector.broadcast %1 : vector<1x32xf32> to vector<16x32xf32>
    %20 = arith.mulf %18, %19 : vector<16x32xf32>
    %21 = vector.broadcast %2 : vector<1x32xf32> to vector<16x32xf32>
    %22 = arith.addf %20, %21 : vector<16x32xf32>
    %c0_9 = arith.constant 0 : index
    %c0_10 = arith.constant 0 : index
    %c0_11 = arith.constant 0 : index
    %23 = vector.load %arg2[%c0_9, %c0_10, %c0_11] : memref<2x1x8xf32, #tpu.memory_space<vmem>>, vector<2x1x8xf32>
    %24 = arith.truncf %22 : vector<16x32xf32> to vector<16x32xbf16>
    %c0_12 = arith.constant 0 : index
    %c0_13 = arith.constant 0 : index
    %c0_14 = arith.constant 0 : index
    %25 = vector.load %arg5[%c0_12, %c0_13, %c0_14] : memref<2x32x96xbf16, #tpu.memory_space<vmem>>, vector<1x32x96xbf16>
    %26 = vector.shape_cast %25 : vector<1x32x96xbf16> to vector<32x96xbf16>
    %cst_15 = arith.constant dense<0.000000e+00> : vector<16x96xf32>
    %27 = tpu.matmul %24, %26, %cst_15 {dimension_numbers = #tpu.dot_dimension_numbers<[1], [0], [0], [1], [0, 0, 1, 1], [], []>} : vector<16x32xbf16>, vector<32x96xbf16>, vector<16x96xf32> -> vector<16x96xf32>
    %c0_16 = arith.constant 0 : index
    %c0_17 = arith.constant 0 : index
    %c0_18 = arith.constant 0 : index
    %28 = vector.load %arg6[%c0_16, %c0_17, %c0_18] : memref<2x1x96xf32, #tpu.memory_space<vmem>>, vector<1x1x96xf32>
    %29 = vector.shape_cast %28 : vector<1x1x96xf32> to vector<1x96xf32>
    %30 = vector.broadcast %29 : vector<1x96xf32> to vector<16x96xf32>
    %31 = arith.addf %27, %30 : vector<16x96xf32>
    %32 = vector.shape_cast %31 : vector<16x96xf32> to vector<2x8x96xf32>
    %33 = vector.extract_strided_slice %32 {offsets = [0, 0, 0], sizes = [2, 8, 16], strides = [1, 1, 1]} : vector<2x8x96xf32> to vector<2x8x16xf32>
    %34 = arith.truncf %33 : vector<2x8x16xf32> to vector<2x8x16xbf16>
    %35 = vector.extract_strided_slice %32 {offsets = [0, 0, 32], sizes = [2, 8, 16], strides = [1, 1, 1]} : vector<2x8x96xf32> to vector<2x8x16xf32>
    %36 = arith.truncf %35 : vector<2x8x16xf32> to vector<2x8x16xbf16>
    %37 = vector.extract_strided_slice %32 {offsets = [0, 0, 64], sizes = [2, 8, 16], strides = [1, 1, 1]} : vector<2x8x96xf32> to vector<2x8x16xf32>
    %38 = arith.truncf %37 : vector<2x8x16xf32> to vector<2x8x16xbf16>
    "tpu.trace_start"() <{level = 10 : i32, message = "bqd,bkd->bqk"}> : () -> ()
    %cst_19 = arith.constant dense<0.000000e+00> : vector<2x8x8xf32>
    %39 = tpu.matmul %34, %36, %cst_19 {dimension_numbers = #tpu.dot_dimension_numbers<[2], [2], [1], [1], [0, 0, 0, 1, 1, 1], [0], [0]>} : vector<2x8x16xbf16>, vector<2x8x16xbf16>, vector<2x8x8xf32> -> vector<2x8x8xf32>
    "tpu.trace_stop"() : () -> ()
    %40 = vector.broadcast %23 : vector<2x1x8xf32> to vector<2x8x8xf32>
    %41 = arith.addf %39, %40 : vector<2x8x8xf32>
    %cst_20 = arith.constant dense<0xFF800000> : vector<2x8xf32>
    %42 = vector.multi_reduction <maximumf>, %41, %cst_20 [2] : vector<2x8x8xf32> to vector<2x8xf32>
    %43 = vector.shape_cast %42 : vector<2x8xf32> to vector<2x8x1xf32>
    %44 = vector.broadcast %43 : vector<2x8x1xf32> to vector<2x8x8xf32>
    %45 = arith.subf %41, %44 : vector<2x8x8xf32>
    %46 = math.exp %45 : vector<2x8x8xf32>
    %cst_21 = arith.constant dense<0.000000e+00> : vector<2x8xf32>
    %47 = vector.multi_reduction <add>, %46, %cst_21 [2] : vector<2x8x8xf32> to vector<2x8xf32>
    %48 = vector.shape_cast %47 : vector<2x8xf32> to vector<2x8x1xf32>
    %49 = tpu.reciprocal %48 {approx = true} : vector<2x8x1xf32> -> vector<2x8x1xf32>
    %50 = vector.broadcast %49 : vector<2x8x1xf32> to vector<2x8x8xf32>
    %51 = arith.mulf %46, %50 : vector<2x8x8xf32>
    %52 = arith.truncf %51 : vector<2x8x8xf32> to vector<2x8x8xbf16>
    "tpu.trace_start"() <{level = 10 : i32, message = "bqk,bkd->bqd"}> : () -> ()
    %cst_22 = arith.constant dense<0.000000e+00> : vector<2x8x16xf32>
    %53 = tpu.matmul %52, %38, %cst_22 {dimension_numbers = #tpu.dot_dimension_numbers<[2], [1], [1], [2], [0, 0, 0, 1, 1, 2], [0], [0]>} : vector<2x8x8xbf16>, vector<2x8x16xbf16>, vector<2x8x16xf32> -> vector<2x8x16xf32>
    "tpu.trace_stop"() : () -> ()
    %54 = vector.extract_strided_slice %32 {offsets = [0, 0, 16], sizes = [2, 8, 16], strides = [1, 1, 1]} : vector<2x8x96xf32> to vector<2x8x16xf32>
    %55 = arith.truncf %54 : vector<2x8x16xf32> to vector<2x8x16xbf16>
    %56 = vector.extract_strided_slice %32 {offsets = [0, 0, 48], sizes = [2, 8, 16], strides = [1, 1, 1]} : vector<2x8x96xf32> to vector<2x8x16xf32>
    %57 = arith.truncf %56 : vector<2x8x16xf32> to vector<2x8x16xbf16>
    %58 = vector.extract_strided_slice %32 {offsets = [0, 0, 80], sizes = [2, 8, 16], strides = [1, 1, 1]} : vector<2x8x96xf32> to vector<2x8x16xf32>
    %59 = arith.truncf %58 : vector<2x8x16xf32> to vector<2x8x16xbf16>
    "tpu.trace_start"() <{level = 10 : i32, message = "bqd,bkd->bqk"}> : () -> ()
    %cst_23 = arith.constant dense<0.000000e+00> : vector<2x8x8xf32>
    %60 = tpu.matmul %55, %57, %cst_23 {dimension_numbers = #tpu.dot_dimension_numbers<[2], [2], [1], [1], [0, 0, 0, 1, 1, 1], [0], [0]>} : vector<2x8x16xbf16>, vector<2x8x16xbf16>, vector<2x8x8xf32> -> vector<2x8x8xf32>
    "tpu.trace_stop"() : () -> ()
    %61 = vector.broadcast %23 : vector<2x1x8xf32> to vector<2x8x8xf32>
    %62 = arith.addf %60, %61 : vector<2x8x8xf32>
    %cst_24 = arith.constant dense<0xFF800000> : vector<2x8xf32>
    %63 = vector.multi_reduction <maximumf>, %62, %cst_24 [2] : vector<2x8x8xf32> to vector<2x8xf32>
    %64 = vector.shape_cast %63 : vector<2x8xf32> to vector<2x8x1xf32>
    %65 = vector.broadcast %64 : vector<2x8x1xf32> to vector<2x8x8xf32>
    %66 = arith.subf %62, %65 : vector<2x8x8xf32>
    %67 = math.exp %66 : vector<2x8x8xf32>
    %cst_25 = arith.constant dense<0.000000e+00> : vector<2x8xf32>
    %68 = vector.multi_reduction <add>, %67, %cst_25 [2] : vector<2x8x8xf32> to vector<2x8xf32>
    %69 = vector.shape_cast %68 : vector<2x8xf32> to vector<2x8x1xf32>
    %70 = tpu.reciprocal %69 {approx = true} : vector<2x8x1xf32> -> vector<2x8x1xf32>
    %71 = vector.broadcast %70 : vector<2x8x1xf32> to vector<2x8x8xf32>
    %72 = arith.mulf %67, %71 : vector<2x8x8xf32>
    %73 = arith.truncf %72 : vector<2x8x8xf32> to vector<2x8x8xbf16>
    "tpu.trace_start"() <{level = 10 : i32, message = "bqk,bkd->bqd"}> : () -> ()
    %cst_26 = arith.constant dense<0.000000e+00> : vector<2x8x16xf32>
    %74 = tpu.matmul %73, %59, %cst_26 {dimension_numbers = #tpu.dot_dimension_numbers<[2], [1], [1], [2], [0, 0, 0, 1, 1, 2], [0], [0]>} : vector<2x8x8xbf16>, vector<2x8x16xbf16>, vector<2x8x16xf32> -> vector<2x8x16xf32>
    "tpu.trace_stop"() : () -> ()
    %75 = tpu.concatenate %53, %74 in 2 : vector<2x8x16xf32>, vector<2x8x16xf32> -> vector<2x8x32xf32>
    %76 = vector.shape_cast %75 : vector<2x8x32xf32> to vector<16x32xf32>
    %77 = arith.truncf %76 : vector<16x32xf32> to vector<16x32xbf16>
    %c0_27 = arith.constant 0 : index
    %c0_28 = arith.constant 0 : index
    %c0_29 = arith.constant 0 : index
    %78 = vector.load %arg7[%c0_27, %c0_28, %c0_29] : memref<2x32x32xbf16, #tpu.memory_space<vmem>>, vector<1x32x32xbf16>
    %79 = vector.shape_cast %78 : vector<1x32x32xbf16> to vector<32x32xbf16>
    %cst_30 = arith.constant dense<0.000000e+00> : vector<16x32xf32>
    %80 = tpu.matmul %77, %79, %cst_30 {dimension_numbers = #tpu.dot_dimension_numbers<[1], [0], [0], [1], [0, 0, 1, 1], [], []>} : vector<16x32xbf16>, vector<32x32xbf16>, vector<16x32xf32> -> vector<16x32xf32>
    %c0_31 = arith.constant 0 : index
    %c0_32 = arith.constant 0 : index
    %c0_33 = arith.constant 0 : index
    %81 = vector.load %arg8[%c0_31, %c0_32, %c0_33] : memref<2x1x32xf32, #tpu.memory_space<vmem>>, vector<1x1x32xf32>
    %82 = vector.shape_cast %81 : vector<1x1x32xf32> to vector<1x32xf32>
    %83 = vector.broadcast %82 : vector<1x32xf32> to vector<16x32xf32>
    %84 = arith.addf %80, %83 : vector<16x32xf32>
    %85 = arith.addf %22, %84 : vector<16x32xf32>
    %c0_34 = arith.constant 0 : index
    %c0_35 = arith.constant 0 : index
    %c0_36 = arith.constant 0 : index
    %86 = vector.load %arg9[%c0_34, %c0_35, %c0_36] : memref<2x1x32xf32, #tpu.memory_space<vmem>>, vector<1x1x32xf32>
    %87 = vector.shape_cast %86 : vector<1x1x32xf32> to vector<1x32xf32>
    %c0_37 = arith.constant 0 : index
    %c0_38 = arith.constant 0 : index
    %c0_39 = arith.constant 0 : index
    %88 = vector.load %arg10[%c0_37, %c0_38, %c0_39] : memref<2x1x32xf32, #tpu.memory_space<vmem>>, vector<1x1x32xf32>
    %89 = vector.shape_cast %88 : vector<1x1x32xf32> to vector<1x32xf32>
    %cst_40 = arith.constant dense<0.000000e+00> : vector<16xf32>
    %90 = vector.multi_reduction <add>, %85, %cst_40 [1] : vector<16x32xf32> to vector<16xf32>
    %91 = vector.shape_cast %90 : vector<16xf32> to vector<16x1xf32>
    %cst_41 = arith.constant 3.200000e+01 : f32
    %92 = vector.broadcast %cst_41 : f32 to vector<16x1xf32>
    %93 = arith.divf %91, %92 : vector<16x1xf32>
    %94 = vector.broadcast %93 : vector<16x1xf32> to vector<16x32xf32>
    %95 = arith.subf %85, %94 : vector<16x32xf32>
    %96 = arith.mulf %95, %95 : vector<16x32xf32>
    %cst_42 = arith.constant dense<0.000000e+00> : vector<16xf32>
    %97 = vector.multi_reduction <add>, %96, %cst_42 [1] : vector<16x32xf32> to vector<16xf32>
    %98 = vector.shape_cast %97 : vector<16xf32> to vector<16x1xf32>
    %cst_43 = arith.constant 3.200000e+01 : f32
    %99 = vector.broadcast %cst_43 : f32 to vector<16x1xf32>
    %100 = arith.divf %98, %99 : vector<16x1xf32>
    %cst_44 = arith.constant 9.99999996E-13 : f32
    %101 = vector.broadcast %cst_44 : f32 to vector<16x1xf32>
    %102 = arith.addf %100, %101 : vector<16x1xf32>
    %103 = math.rsqrt %102 : vector<16x1xf32>
    %104 = vector.broadcast %103 : vector<16x1xf32> to vector<16x32xf32>
    %105 = arith.mulf %95, %104 : vector<16x32xf32>
    %106 = vector.broadcast %87 : vector<1x32xf32> to vector<16x32xf32>
    %107 = arith.mulf %105, %106 : vector<16x32xf32>
    %108 = vector.broadcast %89 : vector<1x32xf32> to vector<16x32xf32>
    %109 = arith.addf %107, %108 : vector<16x32xf32>
    %110 = arith.truncf %109 : vector<16x32xf32> to vector<16x32xbf16>
    %c0_45 = arith.constant 0 : index
    %c0_46 = arith.constant 0 : index
    %c0_47 = arith.constant 0 : index
    %111 = vector.load %arg11[%c0_45, %c0_46, %c0_47] : memref<2x32x64xbf16, #tpu.memory_space<vmem>>, vector<1x32x64xbf16>
    %112 = vector.shape_cast %111 : vector<1x32x64xbf16> to vector<32x64xbf16>
    %cst_48 = arith.constant dense<0.000000e+00> : vector<16x64xf32>
    %113 = tpu.matmul %110, %112, %cst_48 {dimension_numbers = #tpu.dot_dimension_numbers<[1], [0], [0], [1], [0, 0, 1, 1], [], []>} : vector<16x32xbf16>, vector<32x64xbf16>, vector<16x64xf32> -> vector<16x64xf32>
    %c0_49 = arith.constant 0 : index
    %c0_50 = arith.constant 0 : index
    %c0_51 = arith.constant 0 : index
    %114 = vector.load %arg12[%c0_49, %c0_50, %c0_51] : memref<2x1x64xf32, #tpu.memory_space<vmem>>, vector<1x1x64xf32>
    %115 = vector.shape_cast %114 : vector<1x1x64xf32> to vector<1x64xf32>
    %116 = vector.broadcast %115 : vector<1x64xf32> to vector<16x64xf32>
    %117 = arith.addf %113, %116 : vector<16x64xf32>
    %cst_52 = arith.constant 5.000000e-01 : f32
    %118 = vector.broadcast %cst_52 : f32 to vector<16x64xf32>
    %119 = arith.mulf %118, %117 : vector<16x64xf32>
    %cst_53 = arith.constant 4.471500e-02 : f32
    %120 = vector.broadcast %cst_53 : f32 to vector<16x64xf32>
    %121 = arith.mulf %120, %117 : vector<16x64xf32>
    %122 = arith.mulf %121, %117 : vector<16x64xf32>
    %123 = arith.mulf %122, %117 : vector<16x64xf32>
    %124 = arith.addf %117, %123 : vector<16x64xf32>
    %cst_54 = arith.constant 0.797884583 : f32
    %125 = vector.broadcast %cst_54 : f32 to vector<16x64xf32>
    %126 = arith.mulf %125, %124 : vector<16x64xf32>
    %127 = math.tanh %126 : vector<16x64xf32>
    %cst_55 = arith.constant 1.000000e+00 : f32
    %128 = vector.broadcast %cst_55 : f32 to vector<16x64xf32>
    %129 = arith.addf %128, %127 : vector<16x64xf32>
    %130 = arith.mulf %119, %129 : vector<16x64xf32>
    %131 = arith.truncf %130 : vector<16x64xf32> to vector<16x64xbf16>
    %c0_56 = arith.constant 0 : index
    %c0_57 = arith.constant 0 : index
    %c0_58 = arith.constant 0 : index
    %132 = vector.load %arg13[%c0_56, %c0_57, %c0_58] : memref<2x64x32xbf16, #tpu.memory_space<vmem>>, vector<1x64x32xbf16>
    %133 = vector.shape_cast %132 : vector<1x64x32xbf16> to vector<64x32xbf16>
    %cst_59 = arith.constant dense<0.000000e+00> : vector<16x32xf32>
    %134 = tpu.matmul %131, %133, %cst_59 {dimension_numbers = #tpu.dot_dimension_numbers<[1], [0], [0], [1], [0, 0, 1, 1], [], []>} : vector<16x64xbf16>, vector<64x32xbf16>, vector<16x32xf32> -> vector<16x32xf32>
    %c0_60 = arith.constant 0 : index
    %c0_61 = arith.constant 0 : index
    %c0_62 = arith.constant 0 : index
    %135 = vector.load %arg14[%c0_60, %c0_61, %c0_62] : memref<2x1x32xf32, #tpu.memory_space<vmem>>, vector<1x1x32xf32>
    %136 = vector.shape_cast %135 : vector<1x1x32xf32> to vector<1x32xf32>
    %137 = vector.broadcast %136 : vector<1x32xf32> to vector<16x32xf32>
    %138 = arith.addf %134, %137 : vector<16x32xf32>
    %139 = arith.addf %109, %138 : vector<16x32xf32>
    %c0_63 = arith.constant 0 : index
    %c0_64 = arith.constant 0 : index
    %c0_65 = arith.constant 0 : index
    %140 = vector.load %arg15[%c0_63, %c0_64, %c0_65] : memref<2x1x32xf32, #tpu.memory_space<vmem>>, vector<1x1x32xf32>
    %141 = vector.shape_cast %140 : vector<1x1x32xf32> to vector<1x32xf32>
    %c0_66 = arith.constant 0 : index
    %c0_67 = arith.constant 0 : index
    %c0_68 = arith.constant 0 : index
    %142 = vector.load %arg16[%c0_66, %c0_67, %c0_68] : memref<2x1x32xf32, #tpu.memory_space<vmem>>, vector<1x1x32xf32>
    %143 = vector.shape_cast %142 : vector<1x1x32xf32> to vector<1x32xf32>
    %cst_69 = arith.constant dense<0.000000e+00> : vector<16xf32>
    %144 = vector.multi_reduction <add>, %139, %cst_69 [1] : vector<16x32xf32> to vector<16xf32>
    %145 = vector.shape_cast %144 : vector<16xf32> to vector<16x1xf32>
    %cst_70 = arith.constant 3.200000e+01 : f32
    %146 = vector.broadcast %cst_70 : f32 to vector<16x1xf32>
    %147 = arith.divf %145, %146 : vector<16x1xf32>
    %148 = vector.broadcast %147 : vector<16x1xf32> to vector<16x32xf32>
    %149 = arith.subf %139, %148 : vector<16x32xf32>
    %150 = arith.mulf %149, %149 : vector<16x32xf32>
    %cst_71 = arith.constant dense<0.000000e+00> : vector<16xf32>
    %151 = vector.multi_reduction <add>, %150, %cst_71 [1] : vector<16x32xf32> to vector<16xf32>
    %152 = vector.shape_cast %151 : vector<16xf32> to vector<16x1xf32>
    %cst_72 = arith.constant 3.200000e+01 : f32
    %153 = vector.broadcast %cst_72 : f32 to vector<16x1xf32>
    %154 = arith.divf %152, %153 : vector<16x1xf32>
    %cst_73 = arith.constant 9.99999996E-13 : f32
    %155 = vector.broadcast %cst_73 : f32 to vector<16x1xf32>
    %156 = arith.addf %154, %155 : vector<16x1xf32>
    %157 = math.rsqrt %156 : vector<16x1xf32>
    %158 = vector.broadcast %157 : vector<16x1xf32> to vector<16x32xf32>
    %159 = arith.mulf %149, %158 : vector<16x32xf32>
    %160 = vector.broadcast %141 : vector<1x32xf32> to vector<16x32xf32>
    %161 = arith.mulf %159, %160 : vector<16x32xf32>
    %162 = vector.broadcast %143 : vector<1x32xf32> to vector<16x32xf32>
    %163 = arith.addf %161, %162 : vector<16x32xf32>
    %164 = arith.truncf %163 : vector<16x32xf32> to vector<16x32xbf16>
    %c1 = arith.constant 1 : index
    %c0_74 = arith.constant 0 : index
    %c0_75 = arith.constant 0 : index
    %165 = vector.load %arg5[%c1, %c0_74, %c0_75] : memref<2x32x96xbf16, #tpu.memory_space<vmem>>, vector<1x32x96xbf16>
    %166 = vector.shape_cast %165 : vector<1x32x96xbf16> to vector<32x96xbf16>
    %cst_76 = arith.constant dense<0.000000e+00> : vector<16x96xf32>
    %167 = tpu.matmul %164, %166, %cst_76 {dimension_numbers = #tpu.dot_dimension_numbers<[1], [0], [0], [1], [0, 0, 1, 1], [], []>} : vector<16x32xbf16>, vector<32x96xbf16>, vector<16x96xf32> -> vector<16x96xf32>
    %c1_77 = arith.constant 1 : index
    %c0_78 = arith.constant 0 : index
    %c0_79 = arith.constant 0 : index
    %168 = vector.load %arg6[%c1_77, %c0_78, %c0_79] : memref<2x1x96xf32, #tpu.memory_space<vmem>>, vector<1x1x96xf32>
    %169 = vector.shape_cast %168 : vector<1x1x96xf32> to vector<1x96xf32>
    %170 = vector.broadcast %169 : vector<1x96xf32> to vector<16x96xf32>
    %171 = arith.addf %167, %170 : vector<16x96xf32>
    %172 = vector.shape_cast %171 : vector<16x96xf32> to vector<2x8x96xf32>
    %173 = vector.extract_strided_slice %172 {offsets = [0, 0, 0], sizes = [2, 8, 16], strides = [1, 1, 1]} : vector<2x8x96xf32> to vector<2x8x16xf32>
    %174 = arith.truncf %173 : vector<2x8x16xf32> to vector<2x8x16xbf16>
    %175 = vector.extract_strided_slice %172 {offsets = [0, 0, 32], sizes = [2, 8, 16], strides = [1, 1, 1]} : vector<2x8x96xf32> to vector<2x8x16xf32>
    %176 = arith.truncf %175 : vector<2x8x16xf32> to vector<2x8x16xbf16>
    %177 = vector.extract_strided_slice %172 {offsets = [0, 0, 64], sizes = [2, 8, 16], strides = [1, 1, 1]} : vector<2x8x96xf32> to vector<2x8x16xf32>
    %178 = arith.truncf %177 : vector<2x8x16xf32> to vector<2x8x16xbf16>
    "tpu.trace_start"() <{level = 10 : i32, message = "bqd,bkd->bqk"}> : () -> ()
    %cst_80 = arith.constant dense<0.000000e+00> : vector<2x8x8xf32>
    %179 = tpu.matmul %174, %176, %cst_80 {dimension_numbers = #tpu.dot_dimension_numbers<[2], [2], [1], [1], [0, 0, 0, 1, 1, 1], [0], [0]>} : vector<2x8x16xbf16>, vector<2x8x16xbf16>, vector<2x8x8xf32> -> vector<2x8x8xf32>
    "tpu.trace_stop"() : () -> ()
    %180 = vector.broadcast %23 : vector<2x1x8xf32> to vector<2x8x8xf32>
    %181 = arith.addf %179, %180 : vector<2x8x8xf32>
    %cst_81 = arith.constant dense<0xFF800000> : vector<2x8xf32>
    %182 = vector.multi_reduction <maximumf>, %181, %cst_81 [2] : vector<2x8x8xf32> to vector<2x8xf32>
    %183 = vector.shape_cast %182 : vector<2x8xf32> to vector<2x8x1xf32>
    %184 = vector.broadcast %183 : vector<2x8x1xf32> to vector<2x8x8xf32>
    %185 = arith.subf %181, %184 : vector<2x8x8xf32>
    %186 = math.exp %185 : vector<2x8x8xf32>
    %cst_82 = arith.constant dense<0.000000e+00> : vector<2x8xf32>
    %187 = vector.multi_reduction <add>, %186, %cst_82 [2] : vector<2x8x8xf32> to vector<2x8xf32>
    %188 = vector.shape_cast %187 : vector<2x8xf32> to vector<2x8x1xf32>
    %189 = tpu.reciprocal %188 {approx = true} : vector<2x8x1xf32> -> vector<2x8x1xf32>
    %190 = vector.broadcast %189 : vector<2x8x1xf32> to vector<2x8x8xf32>
    %191 = arith.mulf %186, %190 : vector<2x8x8xf32>
    %192 = arith.truncf %191 : vector<2x8x8xf32> to vector<2x8x8xbf16>
    "tpu.trace_start"() <{level = 10 : i32, message = "bqk,bkd->bqd"}> : () -> ()
    %cst_83 = arith.constant dense<0.000000e+00> : vector<2x8x16xf32>
    %193 = tpu.matmul %192, %178, %cst_83 {dimension_numbers = #tpu.dot_dimension_numbers<[2], [1], [1], [2], [0, 0, 0, 1, 1, 2], [0], [0]>} : vector<2x8x8xbf16>, vector<2x8x16xbf16>, vector<2x8x16xf32> -> vector<2x8x16xf32>
    "tpu.trace_stop"() : () -> ()
    %194 = vector.extract_strided_slice %172 {offsets = [0, 0, 16], sizes = [2, 8, 16], strides = [1, 1, 1]} : vector<2x8x96xf32> to vector<2x8x16xf32>
    %195 = arith.truncf %194 : vector<2x8x16xf32> to vector<2x8x16xbf16>
    %196 = vector.extract_strided_slice %172 {offsets = [0, 0, 48], sizes = [2, 8, 16], strides = [1, 1, 1]} : vector<2x8x96xf32> to vector<2x8x16xf32>
    %197 = arith.truncf %196 : vector<2x8x16xf32> to vector<2x8x16xbf16>
    %198 = vector.extract_strided_slice %172 {offsets = [0, 0, 80], sizes = [2, 8, 16], strides = [1, 1, 1]} : vector<2x8x96xf32> to vector<2x8x16xf32>
    %199 = arith.truncf %198 : vector<2x8x16xf32> to vector<2x8x16xbf16>
    "tpu.trace_start"() <{level = 10 : i32, message = "bqd,bkd->bqk"}> : () -> ()
    %cst_84 = arith.constant dense<0.000000e+00> : vector<2x8x8xf32>
    %200 = tpu.matmul %195, %197, %cst_84 {dimension_numbers = #tpu.dot_dimension_numbers<[2], [2], [1], [1], [0, 0, 0, 1, 1, 1], [0], [0]>} : vector<2x8x16xbf16>, vector<2x8x16xbf16>, vector<2x8x8xf32> -> vector<2x8x8xf32>
    "tpu.trace_stop"() : () -> ()
    %201 = vector.broadcast %23 : vector<2x1x8xf32> to vector<2x8x8xf32>
    %202 = arith.addf %200, %201 : vector<2x8x8xf32>
    %cst_85 = arith.constant dense<0xFF800000> : vector<2x8xf32>
    %203 = vector.multi_reduction <maximumf>, %202, %cst_85 [2] : vector<2x8x8xf32> to vector<2x8xf32>
    %204 = vector.shape_cast %203 : vector<2x8xf32> to vector<2x8x1xf32>
    %205 = vector.broadcast %204 : vector<2x8x1xf32> to vector<2x8x8xf32>
    %206 = arith.subf %202, %205 : vector<2x8x8xf32>
    %207 = math.exp %206 : vector<2x8x8xf32>
    %cst_86 = arith.constant dense<0.000000e+00> : vector<2x8xf32>
    %208 = vector.multi_reduction <add>, %207, %cst_86 [2] : vector<2x8x8xf32> to vector<2x8xf32>
    %209 = vector.shape_cast %208 : vector<2x8xf32> to vector<2x8x1xf32>
    %210 = tpu.reciprocal %209 {approx = true} : vector<2x8x1xf32> -> vector<2x8x1xf32>
    %211 = vector.broadcast %210 : vector<2x8x1xf32> to vector<2x8x8xf32>
    %212 = arith.mulf %207, %211 : vector<2x8x8xf32>
    %213 = arith.truncf %212 : vector<2x8x8xf32> to vector<2x8x8xbf16>
    "tpu.trace_start"() <{level = 10 : i32, message = "bqk,bkd->bqd"}> : () -> ()
    %cst_87 = arith.constant dense<0.000000e+00> : vector<2x8x16xf32>
    %214 = tpu.matmul %213, %199, %cst_87 {dimension_numbers = #tpu.dot_dimension_numbers<[2], [1], [1], [2], [0, 0, 0, 1, 1, 2], [0], [0]>} : vector<2x8x8xbf16>, vector<2x8x16xbf16>, vector<2x8x16xf32> -> vector<2x8x16xf32>
    "tpu.trace_stop"() : () -> ()
    %215 = tpu.concatenate %193, %214 in 2 : vector<2x8x16xf32>, vector<2x8x16xf32> -> vector<2x8x32xf32>
    %216 = vector.shape_cast %215 : vector<2x8x32xf32> to vector<16x32xf32>
    %217 = arith.truncf %216 : vector<16x32xf32> to vector<16x32xbf16>
    %c1_88 = arith.constant 1 : index
    %c0_89 = arith.constant 0 : index
    %c0_90 = arith.constant 0 : index
    %218 = vector.load %arg7[%c1_88, %c0_89, %c0_90] : memref<2x32x32xbf16, #tpu.memory_space<vmem>>, vector<1x32x32xbf16>
    %219 = vector.shape_cast %218 : vector<1x32x32xbf16> to vector<32x32xbf16>
    %cst_91 = arith.constant dense<0.000000e+00> : vector<16x32xf32>
    %220 = tpu.matmul %217, %219, %cst_91 {dimension_numbers = #tpu.dot_dimension_numbers<[1], [0], [0], [1], [0, 0, 1, 1], [], []>} : vector<16x32xbf16>, vector<32x32xbf16>, vector<16x32xf32> -> vector<16x32xf32>
    %c1_92 = arith.constant 1 : index
    %c0_93 = arith.constant 0 : index
    %c0_94 = arith.constant 0 : index
    %221 = vector.load %arg8[%c1_92, %c0_93, %c0_94] : memref<2x1x32xf32, #tpu.memory_space<vmem>>, vector<1x1x32xf32>
    %222 = vector.shape_cast %221 : vector<1x1x32xf32> to vector<1x32xf32>
    %223 = vector.broadcast %222 : vector<1x32xf32> to vector<16x32xf32>
    %224 = arith.addf %220, %223 : vector<16x32xf32>
    %225 = arith.addf %163, %224 : vector<16x32xf32>
    %c1_95 = arith.constant 1 : index
    %c0_96 = arith.constant 0 : index
    %c0_97 = arith.constant 0 : index
    %226 = vector.load %arg9[%c1_95, %c0_96, %c0_97] : memref<2x1x32xf32, #tpu.memory_space<vmem>>, vector<1x1x32xf32>
    %227 = vector.shape_cast %226 : vector<1x1x32xf32> to vector<1x32xf32>
    %c1_98 = arith.constant 1 : index
    %c0_99 = arith.constant 0 : index
    %c0_100 = arith.constant 0 : index
    %228 = vector.load %arg10[%c1_98, %c0_99, %c0_100] : memref<2x1x32xf32, #tpu.memory_space<vmem>>, vector<1x1x32xf32>
    %229 = vector.shape_cast %228 : vector<1x1x32xf32> to vector<1x32xf32>
    %cst_101 = arith.constant dense<0.000000e+00> : vector<16xf32>
    %230 = vector.multi_reduction <add>, %225, %cst_101 [1] : vector<16x32xf32> to vector<16xf32>
    %231 = vector.shape_cast %230 : vector<16xf32> to vector<16x1xf32>
    %cst_102 = arith.constant 3.200000e+01 : f32
    %232 = vector.broadcast %cst_102 : f32 to vector<16x1xf32>
    %233 = arith.divf %231, %232 : vector<16x1xf32>
    %234 = vector.broadcast %233 : vector<16x1xf32> to vector<16x32xf32>
    %235 = arith.subf %225, %234 : vector<16x32xf32>
    %236 = arith.mulf %235, %235 : vector<16x32xf32>
    %cst_103 = arith.constant dense<0.000000e+00> : vector<16xf32>
    %237 = vector.multi_reduction <add>, %236, %cst_103 [1] : vector<16x32xf32> to vector<16xf32>
    %238 = vector.shape_cast %237 : vector<16xf32> to vector<16x1xf32>
    %cst_104 = arith.constant 3.200000e+01 : f32
    %239 = vector.broadcast %cst_104 : f32 to vector<16x1xf32>
    %240 = arith.divf %238, %239 : vector<16x1xf32>
    %cst_105 = arith.constant 9.99999996E-13 : f32
    %241 = vector.broadcast %cst_105 : f32 to vector<16x1xf32>
    %242 = arith.addf %240, %241 : vector<16x1xf32>
    %243 = math.rsqrt %242 : vector<16x1xf32>
    %244 = vector.broadcast %243 : vector<16x1xf32> to vector<16x32xf32>
    %245 = arith.mulf %235, %244 : vector<16x32xf32>
    %246 = vector.broadcast %227 : vector<1x32xf32> to vector<16x32xf32>
    %247 = arith.mulf %245, %246 : vector<16x32xf32>
    %248 = vector.broadcast %229 : vector<1x32xf32> to vector<16x32xf32>
    %249 = arith.addf %247, %248 : vector<16x32xf32>
    %250 = arith.truncf %249 : vector<16x32xf32> to vector<16x32xbf16>
    %c1_106 = arith.constant 1 : index
    %c0_107 = arith.constant 0 : index
    %c0_108 = arith.constant 0 : index
    %251 = vector.load %arg11[%c1_106, %c0_107, %c0_108] : memref<2x32x64xbf16, #tpu.memory_space<vmem>>, vector<1x32x64xbf16>
    %252 = vector.shape_cast %251 : vector<1x32x64xbf16> to vector<32x64xbf16>
    %cst_109 = arith.constant dense<0.000000e+00> : vector<16x64xf32>
    %253 = tpu.matmul %250, %252, %cst_109 {dimension_numbers = #tpu.dot_dimension_numbers<[1], [0], [0], [1], [0, 0, 1, 1], [], []>} : vector<16x32xbf16>, vector<32x64xbf16>, vector<16x64xf32> -> vector<16x64xf32>
    %c1_110 = arith.constant 1 : index
    %c0_111 = arith.constant 0 : index
    %c0_112 = arith.constant 0 : index
    %254 = vector.load %arg12[%c1_110, %c0_111, %c0_112] : memref<2x1x64xf32, #tpu.memory_space<vmem>>, vector<1x1x64xf32>
    %255 = vector.shape_cast %254 : vector<1x1x64xf32> to vector<1x64xf32>
    %256 = vector.broadcast %255 : vector<1x64xf32> to vector<16x64xf32>
    %257 = arith.addf %253, %256 : vector<16x64xf32>
    %cst_113 = arith.constant 5.000000e-01 : f32
    %258 = vector.broadcast %cst_113 : f32 to vector<16x64xf32>
    %259 = arith.mulf %258, %257 : vector<16x64xf32>
    %cst_114 = arith.constant 4.471500e-02 : f32
    %260 = vector.broadcast %cst_114 : f32 to vector<16x64xf32>
    %261 = arith.mulf %260, %257 : vector<16x64xf32>
    %262 = arith.mulf %261, %257 : vector<16x64xf32>
    %263 = arith.mulf %262, %257 : vector<16x64xf32>
    %264 = arith.addf %257, %263 : vector<16x64xf32>
    %cst_115 = arith.constant 0.797884583 : f32
    %265 = vector.broadcast %cst_115 : f32 to vector<16x64xf32>
    %266 = arith.mulf %265, %264 : vector<16x64xf32>
    %267 = math.tanh %266 : vector<16x64xf32>
    %cst_116 = arith.constant 1.000000e+00 : f32
    %268 = vector.broadcast %cst_116 : f32 to vector<16x64xf32>
    %269 = arith.addf %268, %267 : vector<16x64xf32>
    %270 = arith.mulf %259, %269 : vector<16x64xf32>
    %271 = arith.truncf %270 : vector<16x64xf32> to vector<16x64xbf16>
    %c1_117 = arith.constant 1 : index
    %c0_118 = arith.constant 0 : index
    %c0_119 = arith.constant 0 : index
    %272 = vector.load %arg13[%c1_117, %c0_118, %c0_119] : memref<2x64x32xbf16, #tpu.memory_space<vmem>>, vector<1x64x32xbf16>
    %273 = vector.shape_cast %272 : vector<1x64x32xbf16> to vector<64x32xbf16>
    %cst_120 = arith.constant dense<0.000000e+00> : vector<16x32xf32>
    %274 = tpu.matmul %271, %273, %cst_120 {dimension_numbers = #tpu.dot_dimension_numbers<[1], [0], [0], [1], [0, 0, 1, 1], [], []>} : vector<16x64xbf16>, vector<64x32xbf16>, vector<16x32xf32> -> vector<16x32xf32>
    %c1_121 = arith.constant 1 : index
    %c0_122 = arith.constant 0 : index
    %c0_123 = arith.constant 0 : index
    %275 = vector.load %arg14[%c1_121, %c0_122, %c0_123] : memref<2x1x32xf32, #tpu.memory_space<vmem>>, vector<1x1x32xf32>
    %276 = vector.shape_cast %275 : vector<1x1x32xf32> to vector<1x32xf32>
    %277 = vector.broadcast %276 : vector<1x32xf32> to vector<16x32xf32>
    %278 = arith.addf %274, %277 : vector<16x32xf32>
    %279 = arith.addf %249, %278 : vector<16x32xf32>
    %c1_124 = arith.constant 1 : index
    %c0_125 = arith.constant 0 : index
    %c0_126 = arith.constant 0 : index
    %280 = vector.load %arg15[%c1_124, %c0_125, %c0_126] : memref<2x1x32xf32, #tpu.memory_space<vmem>>, vector<1x1x32xf32>
    %281 = vector.shape_cast %280 : vector<1x1x32xf32> to vector<1x32xf32>
    %c1_127 = arith.constant 1 : index
    %c0_128 = arith.constant 0 : index
    %c0_129 = arith.constant 0 : index
    %282 = vector.load %arg16[%c1_127, %c0_128, %c0_129] : memref<2x1x32xf32, #tpu.memory_space<vmem>>, vector<1x1x32xf32>
    %283 = vector.shape_cast %282 : vector<1x1x32xf32> to vector<1x32xf32>
    %cst_130 = arith.constant dense<0.000000e+00> : vector<16xf32>
    %284 = vector.multi_reduction <add>, %279, %cst_130 [1] : vector<16x32xf32> to vector<16xf32>
    %285 = vector.shape_cast %284 : vector<16xf32> to vector<16x1xf32>
    %cst_131 = arith.constant 3.200000e+01 : f32
    %286 = vector.broadcast %cst_131 : f32 to vector<16x1xf32>
    %287 = arith.divf %285, %286 : vector<16x1xf32>
    %288 = vector.broadcast %287 : vector<16x1xf32> to vector<16x32xf32>
    %289 = arith.subf %279, %288 : vector<16x32xf32>
    %290 = arith.mulf %289, %289 : vector<16x32xf32>
    %cst_132 = arith.constant dense<0.000000e+00> : vector<16xf32>
    %291 = vector.multi_reduction <add>, %290, %cst_132 [1] : vector<16x32xf32> to vector<16xf32>
    %292 = vector.shape_cast %291 : vector<16xf32> to vector<16x1xf32>
    %cst_133 = arith.constant 3.200000e+01 : f32
    %293 = vector.broadcast %cst_133 : f32 to vector<16x1xf32>
    %294 = arith.divf %292, %293 : vector<16x1xf32>
    %cst_134 = arith.constant 9.99999996E-13 : f32
    %295 = vector.broadcast %cst_134 : f32 to vector<16x1xf32>
    %296 = arith.addf %294, %295 : vector<16x1xf32>
    %297 = math.rsqrt %296 : vector<16x1xf32>
    %298 = vector.broadcast %297 : vector<16x1xf32> to vector<16x32xf32>
    %299 = arith.mulf %289, %298 : vector<16x32xf32>
    %300 = vector.broadcast %281 : vector<1x32xf32> to vector<16x32xf32>
    %301 = arith.mulf %299, %300 : vector<16x32xf32>
    %302 = vector.broadcast %283 : vector<1x32xf32> to vector<16x32xf32>
    %303 = arith.addf %301, %302 : vector<16x32xf32>
    %304 = arith.truncf %303 : vector<16x32xf32> to vector<16x32xbf16>
    %c0_135 = arith.constant 0 : index
    %c0_136 = arith.constant 0 : index
    %305 = vector.load %arg17[%c0_135, %c0_136] : memref<32x128xbf16, #tpu.memory_space<vmem>>, vector<32x128xbf16>
    %cst_137 = arith.constant dense<0.000000e+00> : vector<16x128xf32>
    %306 = tpu.matmul %304, %305, %cst_137 {dimension_numbers = #tpu.dot_dimension_numbers<[1], [0], [0], [1], [0, 0, 1, 1], [], []>} : vector<16x32xbf16>, vector<32x128xbf16>, vector<16x128xf32> -> vector<16x128xf32>
    %c0_138 = arith.constant 0 : index
    %c0_139 = arith.constant 0 : index
    %307 = vector.load %arg18[%c0_138, %c0_139] : memref<1x128xf32, #tpu.memory_space<vmem>>, vector<1x128xf32>
    %308 = vector.broadcast %307 : vector<1x128xf32> to vector<16x128xf32>
    %309 = arith.addf %306, %308 : vector<16x128xf32>
    %cst_140 = arith.constant dense<0xFF800000> : vector<16xf32>
    %310 = vector.multi_reduction <maximumf>, %309, %cst_140 [1] : vector<16x128xf32> to vector<16xf32>
    %311 = vector.shape_cast %310 : vector<16xf32> to vector<16x1xf32>
    %312 = vector.broadcast %311 : vector<16x1xf32> to vector<16x128xf32>
    %313 = arith.subf %309, %312 : vector<16x128xf32>
    %314 = math.exp %313 : vector<16x128xf32>
    %cst_141 = arith.constant dense<0.000000e+00> : vector<16xf32>
    %315 = vector.multi_reduction <add>, %314, %cst_141 [1] : vector<16x128xf32> to vector<16xf32>
    %316 = vector.shape_cast %315 : vector<16xf32> to vector<16x1xf32>
    %317 = vector.broadcast %316 : vector<16x1xf32> to vector<16x128xf32>
    %318 = arith.divf %314, %317 : vector<16x128xf32>
    %c0_142 = arith.constant 0 : index
    %c0_143 = arith.constant 0 : index
    %319 = vector.load %arg19[%c0_142, %c0_143] : memref<16x128xf32, #tpu.memory_space<vmem>>, vector<16x128xf32>
    tpu.vector_store %arg19[%c0_142, %c0_143], %318 {strides = array<i32>} : memref<16x128xf32, #tpu.memory_space<vmem>>, vector<16x128xf32>,
    return
  }
  func.func @transform_0(%arg0: i32) -> (i32, i32) {
    %c0_i32 = arith.constant 0 : i32
    %c0_i32_0 = arith.constant 0 : i32
    return %arg0, %c0_i32 : i32, i32
  }
  func.func @transform_1(%arg0: i32) -> (i32, i32, i32) {
    %c0_i32 = arith.constant 0 : i32
    %c0_i32_0 = arith.constant 0 : i32
    %c0_i32_1 = arith.constant 0 : i32
    return %arg0, %c0_i32, %c0_i32_0 : i32, i32, i32
  }
  func.func @transform_2(%arg0: i32) -> (i32, i32) {
    %c0_i32 = arith.constant 0 : i32
    %c0_i32_0 = arith.constant 0 : i32
    %c0_i32_1 = arith.constant 0 : i32
    return %c0_i32, %c0_i32_0 : i32, i32
  }
  func.func @transform_3(%arg0: i32) -> (i32, i32) {
    %c0_i32 = arith.constant 0 : i32
    %c0_i32_0 = arith.constant 0 : i32
    %c0_i32_1 = arith.constant 0 : i32
    return %c0_i32, %c0_i32_0 : i32, i32
  }
  func.func @transform_4(%arg0: i32) -> (i32, i32, i32) {
    %c0_i32 = arith.constant 0 : i32
    %c0_i32_0 = arith.constant 0 : i32
    %c0_i32_1 = arith.constant 0 : i32
    %c0_i32_2 = arith.constant 0 : i32
    return %c0_i32, %c0_i32_0, %c0_i32_1 : i32, i32, i32
  }
  func.func @transform_5(%arg0: i32) -> (i32, i32, i32) {
    %c0_i32 = arith.constant 0 : i32
    %c0_i32_0 = arith.constant 0 : i32
    %c0_i32_1 = arith.constant 0 : i32
    %c0_i32_2 = arith.constant 0 : i32
    return %c0_i32, %c0_i32_0, %c0_i32_1 : i32, i32, i32
  }
  func.func @transform_6(%arg0: i32) -> (i32, i32, i32) {
    %c0_i32 = arith.constant 0 : i32
    %c0_i32_0 = arith.constant 0 : i32
    %c0_i32_1 = arith.constant 0 : i32
    %c0_i32_2 = arith.constant 0 : i32
    return %c0_i32, %c0_i32_0, %c0_i32_1 : i32, i32, i32
  }
  func.func @transform_7(%arg0: i32) -> (i32, i32, i32) {
    %c0_i32 = arith.constant 0 : i32
    %c0_i32_0 = arith.constant 0 : i32
    %c0_i32_1 = arith.constant 0 : i32
    %c0_i32_2 = arith.constant 0 : i32
    return %c0_i32, %c0_i32_0, %c0_i32_1 : i32, i32, i32
  }
  func.func @transform_8(%arg0: i32) -> (i32, i32, i32) {
    %c0_i32 = arith.constant 0 : i32
    %c0_i32_0 = arith.constant 0 : i32
    %c0_i32_1 = arith.constant 0 : i32
    %c0_i32_2 = arith.constant 0 : i32
    return %c0_i32, %c0_i32_0, %c0_i32_1 : i32, i32, i32
  }
  func.func @transform_9(%arg0: i32) -> (i32, i32, i32) {
    %c0_i32 = arith.constant 0 : i32
    %c0_i32_0 = arith.constant 0 : i32
    %c0_i32_1 = arith.constant 0 : i32
    %c0_i32_2 = arith.constant 0 : i32
    return %c0_i32, %c0_i32_0, %c0_i32_1 : i32, i32, i32
  }
  func.func @transform_10(%arg0: i32) -> (i32, i32, i32) {
    %c0_i32 = arith.constant 0 : i32
    %c0_i32_0 = arith.constant 0 : i32
    %c0_i32_1 = arith.constant 0 : i32
    %c0_i32_2 = arith.constant 0 : i32
    return %c0_i32, %c0_i32_0, %c0_i32_1 : i32, i32, i32
  }
  func.func @transform_11(%arg0: i32) -> (i32, i32, i32) {
    %c0_i32 = arith.constant 0 : i32
    %c0_i32_0 = arith.constant 0 : i32
    %c0_i32_1 = arith.constant 0 : i32
    %c0_i32_2 = arith.constant 0 : i32
    return %c0_i32, %c0_i32_0, %c0_i32_1 : i32, i32, i32
  }
  func.func @transform_12(%arg0: i32) -> (i32, i32, i32) {
    %c0_i32 = arith.constant 0 : i32
    %c0_i32_0 = arith.constant 0 : i32
    %c0_i32_1 = arith.constant 0 : i32
    %c0_i32_2 = arith.constant 0 : i32
    return %c0_i32, %c0_i32_0, %c0_i32_1 : i32, i32, i32
  }
  func.func @transform_13(%arg0: i32) -> (i32, i32, i32) {
    %c0_i32 = arith.constant 0 : i32
    %c0_i32_0 = arith.constant 0 : i32
    %c0_i32_1 = arith.constant 0 : i32
    %c0_i32_2 = arith.constant 0 : i32
    return %c0_i32, %c0_i32_0, %c0_i32_1 : i32, i32, i32
  }
  func.func @transform_14(%arg0: i32) -> (i32, i32, i32) {
    %c0_i32 = arith.constant 0 : i32
    %c0_i32_0 = arith.constant 0 : i32
    %c0_i32_1 = arith.constant 0 : i32
    %c0_i32_2 = arith.constant 0 : i32
    return %c0_i32, %c0_i32_0, %c0_i32_1 : i32, i32, i32
  }
  func.func @transform_15(%arg0: i32) -> (i32, i32, i32) {
    %c0_i32 = arith.constant 0 : i32
    %c0_i32_0 = arith.constant 0 : i32
    %c0_i32_1 = arith.constant 0 : i32
    %c0_i32_2 = arith.constant 0 : i32
    return %c0_i32, %c0_i32_0, %c0_i32_1 : i32, i32, i32
  }
  func.func @transform_16(%arg0: i32) -> (i32, i32) {
    %c0_i32 = arith.constant 0 : i32
    %c0_i32_0 = arith.constant 0 : i32
    %c0_i32_1 = arith.constant 0 : i32
    return %c0_i32, %c0_i32_0 : i32, i32
  }
  func.func @transform_17(%arg0: i32) -> (i32, i32) {
    %c0_i32 = arith.constant 0 : i32
    %c0_i32_0 = arith.constant 0 : i32
    %c0_i32_1 = arith.constant 0 : i32
    return %c0_i32, %c0_i32_0 : i32, i32
  }
  func.func @transform_18(%arg0: i32) -> (i32, i32) {
    %c0_i32 = arith.constant 0 : i32
    %c0_i32_0 = arith.constant 0 : i32
    return %arg0, %c0_i32 : i32, i32
  }
}

</mosaic_0001>

<bundles_post_ra>
// kernel: tpu_custom_call.1
= control target key start
LH: loop header
LB: loop body
LE: loop exit
PB: predicated region body
PF: predicated region fallthrough
CT: control target
= control target key end

     0   :  { %s3356_s0 = inlined_call_operand.hbm [shape: f32[16,32], index: 0, kind: input, shape index: {}]   ;;  %s3357_s1 = inlined_call_operand.hbm [shape: f32[2,1,8], index: 1, kind: input, shape index: {}]   ;;  %s3358_s2 = inlined_call_operand.vmem [shape: f32[1,32], index: 2, kind: input, shape index: {}]   ;;  %s3359_s3 = inlined_call_operand.hbm [shape: f32[1,32], index: 3, kind: input, shape index: {}]   ;;  %s3360_s4 = inlined_call_operand.vmem [shape: bf16[2,32,96], index: 4, kind: input, shape index: {}]   ;;  %s3361_s5 = inlined_call_operand.hbm [shape: f32[2,1,96], index: 5, kind: input, shape index: {}]   ;;  %s3362_s6 = inlined_call_operand.vmem [shape: bf16[2,32,32], index: 6, kind: input, shape index: {}]   ;;  %s3363_s7 = inlined_call_operand.hbm [shape: f32[2,1,32], index: 7, kind: input, shape index: {}]   ;;  %s3364_s8 = inlined_call_operand.hbm [shape: f32[2,1,32], index: 8, kind: input, shape index: {}]   ;;  %s3365_s9 = inlined_call_operand.hbm [shape: f32[2,1,32], index: 9, kind: input, shape index: {}]   ;;  %s3366_s10 = inlined_call_operand.vmem [shape: bf16[2,32,64], index: 10, kind: input, shape index: {}]   ;;  %s3367_s11 = inlined_call_operand.hbm [shape: f32[2,1,64], index: 11, kind: input, shape index: {}]   ;;  %s3368_s12 = inlined_call_operand.vmem [shape: bf16[2,64,32], index: 12, kind: input, shape index: {}]   ;;  %s3369_s13 = inlined_call_operand.hbm [shape: f32[2,1,32], index: 13, kind: input, shape index: {}]   ;;  %s3370_s14 = inlined_call_operand.vmem [shape: f32[2,1,32], index: 14, kind: input, shape index: {}]   ;;  %s3371_s15 = inlined_call_operand.vmem [shape: f32[2,1,32], index: 15, kind: input, shape index: {}]   ;;  %s3372_s16 = inlined_call_operand.vmem [shape: bf16[32,128], index: 16, kind: input, shape index: {}]   ;;  %s3373_s17 = inlined_call_operand.vmem [shape: f32[1,128], index: 17, kind: input, shape index: {}]   ;;  %s3374_s18 = inlined_call_operand.hbm [shape: f32[16,128], index: 18, kind: output, shape index: {}]  }
   0x1   :  { %3378 = sst [smem:[#allocation24_spill]] %s3356_s0 }
   0x2   :  { %3379 = sst [smem:[#allocation25_spill]] %s3357_s1 }
   0x3   :  { %3380 = sst [smem:[#allocation26_spill]] %s3358_s2 }
   0x4   :  { %3381 = sst [smem:[#allocation27_spill]] %s3373_s17 }
   0x5   :  { %3382 = sst [smem:[#allocation28_spill]] %s3374_s18 }
   0x6   :  { %23 = vsyncpa [#allocation3], 0 }
   0x7   :  { %24 = vsyncpa [#allocation6], 0 }
   0x8   :  { %25 = vsyncpa [#allocation9], 0 }
   0x9   :  { %26 = vsyncpa [#allocation12], 0 }
   0xa   :  { %27 = vsyncpa [#allocation15], 0 }
   0xb   :  { %28 = vsyncpa [#allocation4], 0  ;;  %s2746_s27 = smov [#allocation5]   ;;  %s3383_s0 = sld [smem:[#allocation25_spill]] }
   0xc   :  { %s46_s28 = sshll.u32 %s2746_s27, 4  ;;  %s47_s28 = int_to_ptr.vmem [resolvable:$true] %s46_s28 }
  0x11   :  { %s2514_s19 = scalar_lea.hbm %s3383_s0, 32 }
  0x12   :  { %p2515_p0 = scmp.ne.s32.totalorder %s3383_s0, %s2514_s19  ;;  %p2518_p1 = scmp.lt.u32.totalorder %s2514_s19, %s3383_s0 }
  0x14   :  { %p2520_p2 = pnand %p2518_p1, %p2515_p0 }
  0x16   :  { %2523 = shalt.err (!%p2520_p2)
}
  0x17   :  { %s2524_s2 = scalar_lea.vmem %s47_s28, 32  ;;  %p2529_p4 = scmp.lt.s32.totalorder %s47_s28, %s47_s28 }
  0x18   :  { %p2525_p3 = scmp.ne.s32.totalorder %s47_s28, %s2524_s2  ;;  %p2530_p5 = scmp.lt.s32.totalorder %s2524_s2, %s2524_s2 }
  0x1a   :  { %p2531_p6 = por %p2530_p5, %p2529_p4 }
  0x1c   :  { %p2532_p7 = pnand %p2531_p6, %p2525_p3 }
  0x1e   :  { %2535 = shalt.err (!%p2532_p7)
}
  0x1f   :  { %s2747_s23 = smov 16   ;;  %s2748_s24 = smov 1  }
  0x20   :  { %52 = dma.hbm_to_vmem [thread:$0]  %s3383_s0, 32, %s47_s28, [#allocation6], %s2747_s23, %s2747_s23, %s2748_s24  }
  0x21   :  { %s2749_s27 = smov [#allocation8]   ;;  %s2750_s30 = smov [#allocation11]  }
  0x22   :  { %s72_s29 = sshll.u32 %s2749_s27, 4  ;;  %s98_s19 = sshll.u32 %s2750_s30, 4  ;;  %s73_s29 = int_to_ptr.vmem [resolvable:$true] %s72_s29  ;;  %s99_s19 = int_to_ptr.vmem [resolvable:$true] %s98_s19 }
  0x23   :  { %s2536_s21 = scalar_lea.hbm %s3361_s5, 32 }
  0x24   :  { %p2537_p8 = scmp.ne.s32.totalorder %s3361_s5, %s2536_s21  ;;  %p2540_p9 = scmp.lt.u32.totalorder %s2536_s21, %s3361_s5 }
  0x26   :  { %p2542_p10 = pnand %p2540_p9, %p2537_p8 }
  0x28   :  { %2545 = shalt.err (!%p2542_p10)
}
  0x29   :  { %s2546_s28 = scalar_lea.vmem %s73_s29, 32  ;;  %p2551_p12 = scmp.lt.s32.totalorder %s73_s29, %s73_s29 }
  0x2a   :  { %p2547_p11 = scmp.ne.s32.totalorder %s73_s29, %s2546_s28  ;;  %p2552_p13 = scmp.lt.s32.totalorder %s2546_s28, %s2546_s28 }
  0x2c   :  { %p2553_p0 = por %p2552_p13, %p2551_p12 }
  0x2e   :  { %p2554_p1 = pnand %p2553_p0, %p2547_p11 }
  0x30   :  { %2557 = shalt.err (!%p2554_p1)
}
  0x31   :  { %78 = dma.hbm_to_vmem [thread:$0]  %s3361_s5, 32, %s73_s29, [#allocation9], %s2747_s23, %s2747_s23, %s2748_s24  }
  0x32   :  { %s2558_s18 = scalar_lea.hbm %s3364_s8, 32 }
  0x33   :  { %p2559_p2 = scmp.ne.s32.totalorder %s3364_s8, %s2558_s18  ;;  %p2562_p3 = scmp.lt.u32.totalorder %s2558_s18, %s3364_s8 }
  0x35   :  { %p2564_p4 = pnand %p2562_p3, %p2559_p2 }
  0x37   :  { %2567 = shalt.err (!%p2564_p4)
}
  0x38   :  { %s2568_s21 = scalar_lea.vmem %s99_s19, 32  ;;  %p2573_p6 = scmp.lt.s32.totalorder %s99_s19, %s99_s19 }
  0x39   :  { %p2569_p5 = scmp.ne.s32.totalorder %s99_s19, %s2568_s21  ;;  %p2574_p7 = scmp.lt.s32.totalorder %s2568_s21, %s2568_s21 }
  0x3b   :  { %p2575_p8 = por %p2574_p7, %p2573_p6 }
  0x3d   :  { %p2576_p9 = pnand %p2575_p8, %p2569_p5 }
  0x3f   :  { %2579 = shalt.err (!%p2576_p9)
}
  0x40   :  { %104 = dma.hbm_to_vmem [thread:$0]  %s3364_s8, 32, %s99_s19, [#allocation12], %s2747_s23, %s2747_s23, %s2748_s24  }
  0x41   :  { %s2751_s22 = smov [#allocation14]   ;;  %s2752_s28 = smov [#allocation2]  }
  0x42   :  { %s124_s2 = sshll.u32 %s2751_s22, 4  ;;  %s34_s0 = sshll.u32 %s2752_s28, 4  ;;  %s125_s2 = int_to_ptr.vmem [resolvable:$true] %s124_s2  ;;  %s35_s0 = int_to_ptr.vmem [resolvable:$true] %s34_s0 }
  0x43   :  { %s2580_s17 = scalar_lea.hbm %s3367_s11, 32 }
  0x44   :  { %p2581_p10 = scmp.ne.s32.totalorder %s3367_s11, %s2580_s17  ;;  %p2584_p11 = scmp.lt.u32.totalorder %s2580_s17, %s3367_s11 }
  0x46   :  { %p2586_p12 = pnand %p2584_p11, %p2581_p10 }
  0x48   :  { %2589 = shalt.err (!%p2586_p12)
}
  0x49   :  { %s2590_s8 = scalar_lea.vmem %s125_s2, 32  ;;  %p2595_p0 = scmp.lt.s32.totalorder %s125_s2, %s125_s2 }
  0x4a   :  { %p2591_p13 = scmp.ne.s32.totalorder %s125_s2, %s2590_s8  ;;  %p2596_p1 = scmp.lt.s32.totalorder %s2590_s8, %s2590_s8 }
  0x4c   :  { %p2597_p2 = por %p2596_p1, %p2595_p0 }
  0x4e   :  { %p2598_p3 = pnand %p2597_p2, %p2591_p13 }
  0x50   :  { %2601 = shalt.err (!%p2598_p3)
}
  0x51   :  { %130 = dma.hbm_to_vmem [thread:$0]  %s3367_s11, 32, %s125_s2, [#allocation15], %s2747_s23, %s2747_s23, %s2748_s24  }
  0x52   :  { %s3384_s29 = sld [smem:[#allocation24_spill]] }
  0x58   :  { %s2602_s22 = scalar_lea.hbm %s3384_s29, 256 }
  0x59   :  { %p2603_p4 = scmp.ne.s32.totalorder %s3384_s29, %s2602_s22  ;;  %p2606_p5 = scmp.lt.u32.totalorder %s2602_s22, %s3384_s29 }
  0x5b   :  { %p2608_p6 = pnand %p2606_p5, %p2603_p4 }
  0x5d   :  { %2611 = shalt.err (!%p2608_p6)
}
  0x5e   :  { %s2612_s18 = scalar_lea.vmem %s35_s0, 256  ;;  %p2617_p8 = scmp.lt.s32.totalorder %s35_s0, %s35_s0 }
  0x5f   :  { %p2613_p7 = scmp.ne.s32.totalorder %s35_s0, %s2612_s18  ;;  %p2618_p9 = scmp.lt.s32.totalorder %s2612_s18, %s2612_s18 }
  0x61   :  { %p2619_p10 = por %p2618_p9, %p2617_p8 }
  0x63   :  { %p2620_p11 = pnand %p2619_p10, %p2613_p7 }
  0x65   :  { %2623 = shalt.err (!%p2620_p11)
}
  0x66   :  { %s2753_s11 = smov 128   ;;  %s2754_s2 = smov 8  }
  0x67   :  { %40 = dma.hbm_to_vmem [thread:$0]  %s3384_s29, 256, %s35_s0, [#allocation3], %s2753_s11, %s2753_s11, %s2754_s2  }
  0x68   :  { %s2755_s1 = smov [#allocation7]   ;;  %s2756_s19 = smov [#allocation10]  }
  0x69   :  { %s61_s8 = sshll.u32 %s2755_s1, 4  ;;  %s86_s20 = sshll.u32 %s2756_s19, 4  ;;  %s62_s8 = int_to_ptr.vmem [resolvable:$true] %s61_s8  ;;  %s87_s20 = int_to_ptr.vmem [resolvable:$true] %s86_s20 }
  0x6a   :  { %s2624_s22 = scalar_lea.hbm %s3359_s3, 16 }
  0x6b   :  { %p2625_p12 = scmp.ne.s32.totalorder %s3359_s3, %s2624_s22  ;;  %p2628_p13 = scmp.lt.u32.totalorder %s2624_s22, %s3359_s3 }
  0x6d   :  { %p2630_p0 = pnand %p2628_p13, %p2625_p12 }
  0x6f   :  { %2633 = shalt.err (!%p2630_p0)
}
  0x70   :  { %s2634_s0 = scalar_lea.vmem %s62_s8, 16  ;;  %s2638_s29 = scalar_lea.vmem %s62_s8, 32 }
  0x71   :  { %p2635_p1 = scmp.ne.s32.totalorder %s62_s8, %s2634_s0  ;;  %p2639_p2 = scmp.lt.s32.totalorder %s62_s8, %s62_s8 }
  0x72   :  { %p2640_p3 = scmp.lt.s32.totalorder %s2638_s29, %s2634_s0 }
  0x74   :  { %p2641_p4 = por %p2640_p3, %p2639_p2 }
  0x76   :  { %p2642_p5 = pnand %p2641_p4, %p2635_p1 }
  0x78   :  { %2645 = shalt.err (!%p2642_p5)
}
  0x79   :  { %64 = dma.hbm_to_vmem [thread:$0]  %s3359_s3, 16, %s62_s8, [#allocation6]  }
  0x7a   :  { %s2646_s19 = scalar_lea.hbm %s3363_s7, 32 }
  0x7b   :  { %p2647_p6 = scmp.ne.s32.totalorder %s3363_s7, %s2646_s19  ;;  %p2650_p7 = scmp.lt.u32.totalorder %s2646_s19, %s3363_s7 }
  0x7d   :  { %p2652_p8 = pnand %p2650_p7, %p2647_p6 }
  0x7f   :  { %2655 = shalt.err (!%p2652_p8)
}
  0x80   :  { %s2656_s25 = scalar_lea.vmem %s87_s20, 32  ;;  %p2661_p10 = scmp.lt.s32.totalorder %s87_s20, %s87_s20 }
  0x81   :  { %p2657_p9 = scmp.ne.s32.totalorder %s87_s20, %s2656_s25  ;;  %p2662_p11 = scmp.lt.s32.totalorder %s2656_s25, %s2656_s25 }
  0x83   :  { %p2663_p12 = por %p2662_p11, %p2661_p10 }
  0x85   :  { %p2664_p13 = pnand %p2663_p12, %p2657_p9 }
  0x87   :  { %2667 = shalt.err (!%p2664_p13)
}
  0x88   :  { %92 = dma.hbm_to_vmem [thread:$0]  %s3363_s7, 32, %s87_s20, [#allocation9], %s2747_s23, %s2747_s23, %s2748_s24  }
  0x89   :  { %s2757_s26 = smov [#allocation13]   ;;  %s2758_s0 = smov [#allocation16]  }
  0x8a   :  { %s110_s17 = sshll.u32 %s2757_s26, 4  ;;  %s138_s29 = sshll.u32 %s2758_s0, 4  ;;  %s111_s17 = int_to_ptr.vmem [resolvable:$true] %s110_s17  ;;  %s139_s29 = int_to_ptr.vmem [resolvable:$true] %s138_s29 }
  0x8b   :  { %s2668_s30 = scalar_lea.hbm %s3365_s9, 32 }
  0x8c   :  { %p2669_p0 = scmp.ne.s32.totalorder %s3365_s9, %s2668_s30  ;;  %p2672_p1 = scmp.lt.u32.totalorder %s2668_s30, %s3365_s9 }
  0x8e   :  { %p2674_p2 = pnand %p2672_p1, %p2669_p0 }
  0x90   :  { %2677 = shalt.err (!%p2674_p2)
}
  0x91   :  { %s2678_s7 = scalar_lea.vmem %s111_s17, 32  ;;  %p2683_p4 = scmp.lt.s32.totalorder %s111_s17, %s111_s17 }
  0x92   :  { %p2679_p3 = scmp.ne.s32.totalorder %s111_s17, %s2678_s7  ;;  %p2684_p5 = scmp.lt.s32.totalorder %s2678_s7, %s2678_s7 }
  0x94   :  { %p2685_p6 = por %p2684_p5, %p2683_p4 }
  0x96   :  { %p2686_p7 = pnand %p2685_p6, %p2679_p3 }
  0x98   :  { %2689 = shalt.err (!%p2686_p7)
}
  0x99   :  { %116 = dma.hbm_to_vmem [thread:$0]  %s3365_s9, 32, %s111_s17, [#allocation12], %s2747_s23, %s2747_s23, %s2748_s24  }
  0x9a   :  { %s2690_s3 = scalar_lea.hbm %s3369_s13, 32 }
  0x9b   :  { %p2691_p8 = scmp.ne.s32.totalorder %s3369_s13, %s2690_s3  ;;  %p2694_p9 = scmp.lt.u32.totalorder %s2690_s3, %s3369_s13 }
  0x9d   :  { %p2696_p10 = pnand %p2694_p9, %p2691_p8 }
  0x9f   :  { %2699 = shalt.err (!%p2696_p10)
}
  0xa0   :  { %s2700_s27 = scalar_lea.vmem %s139_s29, 32  ;;  %p2705_p12 = scmp.lt.s32.totalorder %s139_s29, %s139_s29 }
  0xa1   :  { %p2701_p11 = scmp.ne.s32.totalorder %s139_s29, %s2700_s27  ;;  %p2706_p13 = scmp.lt.s32.totalorder %s2700_s27, %s2700_s27 }
  0xa3   :  { %p2707_p0 = por %p2706_p13, %p2705_p12 }
  0xa5   :  { %p2708_p1 = pnand %p2707_p0, %p2701_p11 }
  0xa7   :  { %2711 = shalt.err (!%p2708_p1)
}
  0xa8   :  { %144 = dma.hbm_to_vmem [thread:$0]  %s3369_s13, 32, %s139_s29, [#allocation15], %s2747_s23, %s2747_s23, %s2748_s24  }
  0xa9   :  { %2734 = dma.done.wait [#allocation3], 256  }
  0xaa   :  { %2735 = vsyncadd [#allocation3], 4294967040 }
  0xab   :  { %2736 = dma.done.wait [#allocation6], 48  }
  0xac   :  { %2737 = vsyncadd [#allocation6], 4294967248 }
  0xad   :  { %2738 = dma.done.wait [#allocation9], 64  }
  0xae   :  { %2739 = vsyncadd [#allocation9], 4294967232 }
  0xaf   :  { %2740 = dma.done.wait [#allocation12], 64  }
  0xb0   :  { %2741 = vsyncadd [#allocation12], 4294967232 }
  0xb1   :  { %2742 = dma.done.wait [#allocation15], 64  }
  0xb2   :  { %2743 = vsyncadd [#allocation15], 4294967232  ;;  %vm185_vm0 = vcmask 261120   ;;  %v181_v0 = vld [vmem:[#allocation2] sm:$0xff]  ;;  %v182_v1 = vld [vmem:[#allocation2 + $0x8] sm:$0xff]  ;;  %v2759_v15 = vmov 0.0  }
  0xb3   :  { %v186_v2 = vsel %vm185_vm0, %v181_v0, 0.0  ;;  %v189_v3 = vsel %vm185_vm0, %v182_v1, 0.0  ;;  %v2424_v14 = vld [vmem:[%s3360_s4] sm:$0xff]   ;;  %2217 = vmatprep.subr.bf16.mxu0 %v2759_v15  ;;  %2225 = vmatprep.subr.bf16.mxu1 %v2759_v15  ;;  %v2425_v16 = vld [vmem:[%s3360_s4 + $0x8] sm:$0xff]   ;;  %vm2760_vm1 = vmmov 0   ;;  %s3385_s21 = sld [smem:[#allocation26_spill]] }
  0xb4   :  { %187 = vadd.xlane.f32.xlu0 %v186_v2  ;;  %2218 = vmatpush3.bf16.msra.mxu0 %v2424_v14  ;;  %v2065_v29 = vld [vmem:[#allocation7] ss:$0 sm:$0xff]  ;;  %v2066_v34 = vld [vmem:[#allocation8] ss:$0 sm:$0xff]  ;;  %s2761_s5 = smov 96   ;;  %vm316_vm2 = vcmask 130048  }
  0xb5   :  { %2221 = vmatprep.mubr.msk.bf16.mxu0 %vm2760_vm1, %v2759_v15  ;;  %2219 = vmatprep.subr.bf16.mxu0 %v2759_v15  ;;  %v3044_v47 = vld [vmem:[#allocation5] ss:$0 sm:$0xff]  ;;  %v3046_v49 = vld [vmem:[#allocation5 + $0x1] ss:$0 sm:$0xff]  ;;  %vm412_vm3 = vcmask 64512   ;;  %s2762_s7 = smov 64  }
  0xb6   :  { %2227 = vmatprep.mubr.msk.bf16.mxu1 %vm2760_vm1, %v2759_v15  ;;  %s2763_s20 = smov 80   ;;  %vm442_vm4 = vcmask 1043456   ;;  %s2764_s22 = smov 112   ;;  %vm1004_vm5 = vcmask 523264  }
  0xb7   :  { %s2765_s28 = smov 48   ;;  %s3386_s27 = sld [smem:[#allocation27_spill]] }
  0xb8   :  { %190 = vadd.xlane.f32.xlu0 %v189_v3  ;;  %2220 = vmatpush3.bf16.msra.mxu0 %v2425_v16 }
  0xb9   :  { %2231 = vmatprep.subr.bf16.mxu0 %v2759_v15  ;;  %v2064_v25 = vld [vmem:[%s3385_s21] ss:$0 sm:$0xff] }
 0x141   :  { %v188_v4 = vpop.xlane.xlu0 %187 }
 0x142   :  { %v193_v5 = vmul.f32 0.03125, %v188_v4 }
 0x144   :  { %v195_v6 = vsub.f32 %v181_v0, %v193_v5 }
 0x145   :  { %v191_v7 = vpop.xlane.xlu0 %190 }
 0x146   :  { %v194_v8 = vmul.f32 0.03125, %v191_v7  ;;  %v197_v9 = vmul.f32 %v195_v6, %v195_v6 }
 0x148   :  { %v196_v10 = vsub.f32 %v182_v1, %v194_v8  ;;  %v199_v11 = vsel %vm185_vm0, %v197_v9, 0.0 }
 0x149   :  { %200 = vadd.xlane.f32.xlu1 %v199_v11 }
 0x14a   :  { %v198_v12 = vmul.f32 %v196_v10, %v196_v10 }
 0x14c   :  { %v202_v13 = vsel %vm185_vm0, %v198_v12, 0.0 }
 0x14d   :  { %203 = vadd.xlane.f32.xlu1 %v202_v13 }
 0x1d6   :  { %v201_v17 = vpop.xlane.xlu1 %200 }
 0x1d7   :  { %v205_v18 = vmul.f32 0.03125, %v201_v17 }
 0x1d9   :  { %v207_v19 = vadd.f32 1e-12, %v205_v18 }
 0x1da   :  { %v204_v20 = vpop.xlane.xlu1 %203 }
 0x1db   :  { %2446 = vrsqrt.f32 %v207_v19  ;;  %v206_v21 = vmul.f32 0.03125, %v204_v20 }
 0x1dd   :  { %v208_v22 = vadd.f32 1e-12, %v206_v21 }
 0x1df   :  { %2448 = vrsqrt.f32 %v208_v22 }
 0x1e5   :  { %v2447_v23 = vpop.eup %2446 }
 0x1e6   :  { %v211_v24 = vmul.f32 %v2447_v23, %v195_v6 }
 0x1e8   :  { %v219_v28 = vmul.f32 %v2064_v25, %v211_v24 }
 0x1e9   :  { %v2449_v26 = vpop.eup %2448 }
 0x1ea   :  { %v212_v27 = vmul.f32 %v2449_v26, %v196_v10  ;;  %v3015_v31 = vadd.f32 %v2065_v29, %v219_v28 }
 0x1ec   :  { %v220_v30 = vmul.f32 %v2064_v25, %v212_v27 }
 0x1ee   :  { %v3017_v32 = vadd.f32 %v2065_v29, %v220_v30 }
 0x1f0   :  { %v231_v33 = vpack.c.bf16 %v3017_v32, %v3015_v31 }
 0x1f2   :  { %2222 = vmatmul.mubr.msk.bf16.vlgmr.msra.gmra.mrb[0].mxu0 %vm185_vm0, %v231_v33 }
 0x1f3   :  { %2233 = vmatprep.mubr.msk.bf16.mxu0 %vm2760_vm1, %v2759_v15 }
 0x2c5   :  { %v292_v35 = vpop.f32.mrb[0].mxu0 }
 0x2c6   :  { %v293_v36 = vadd.f32 %v2066_v34, %v292_v35  ;;  %v2223_v37 = vpop.f32.mrb[1].mxu0 }
 0x2c7   :  { %v295_v38 = vpop.f32.mrb[2].mxu0 }
 0x2c8   :  { %v3024_v39 = vpack.c.bf16 %v293_v36, %v293_v36  ;;  %v296_v40 = vadd.f32 %v2066_v34, %v295_v38  ;;  %v2224_v41 = vpop.f32.mrb[3].mxu0 }
 0x2ca   :  { %v3026_v42 = vpack.c.bf16 %v296_v40, %v296_v40  ;;  %314 = vrot.lane.b32.xlu0 %v3024_v39, %s2761_s5 }
 0x2cc   :  { %364 = vrot.lane.b32.xlu1 %v3026_v42, %s2761_s5 }
 0x33c   :  { %v315_v43 = vpop.permute.xlu0 %314 }
 0x33d   :  { %v321_v44 = vsel %vm316_vm2, %v315_v43, 0 }
 0x33e   :  { %2226 = vmatpush3.bf16.xpose.msra.mxu1 %v321_v44  ;;  %v365_v45 = vpop.permute.xlu1 %364 }
 0x33f   :  { %v370_v46 = vsel %vm316_vm2, %v365_v45, 0  ;;  %2237 = vmatprep.subr.bf16.mxu1 %v2759_v15 }
 0x340   :  { %2232 = vmatpush3.bf16.xpose.msra.mxu0 %v370_v46 }
 0x341   :  { %2243 = vmatprep.subr.bf16.mxu0 %v2759_v15 }
 0x345   :  { %2228 = vmatmul.mubr.msk.bf16.vlgmr.msra.gmra.mrb[0].mxu1 %vm316_vm2, %v3024_v39 }
 0x346   :  { %2239 = vmatprep.mubr.msk.bf16.mxu1 %vm2760_vm1, %v2759_v15 }
 0x347   :  { %2234 = vmatmul.mubr.msk.bf16.vlgmr.msra.gmra.mrb[4].mxu0 %vm316_vm2, %v3026_v42 }
 0x348   :  { %2245 = vmatprep.mubr.msk.bf16.mxu0 %vm2760_vm1, %v2759_v15 }
 0x418   :  { %v357_v48 = vpop.f32.mrb[0].mxu1 }
 0x419   :  { %v358_v50 = vadd.f32 %v3044_v47, %v357_v48  ;;  %v2229_v51 = vpop.f32.mrb[1].mxu1 }
 0x41a   :  { %v360_v52 = vpop.f32.mrb[2].mxu1  ;;  %v406_v53 = vpop.f32.mrb[4].mxu0 }
 0x41b   :  { %v407_v54 = vadd.f32 %v3046_v49, %v406_v53  ;;  %v2230_v55 = vpop.f32.mrb[3].mxu1  ;;  %v2235_v56 = vpop.f32.mrb[5].mxu0  ;;  %v413_v57 = vsel %vm412_vm3, %v358_v50, -inf }
 0x41c   :  { %414 = vmax.xlane.f32.xlu1 %v413_v57  ;;  %v409_v58 = vpop.f32.mrb[6].mxu0 }
 0x41d   :  { %v2236_v59 = vpop.f32.mrb[7].mxu0  ;;  %v416_v60 = vsel %vm412_vm3, %v407_v54, -inf }
 0x41e   :  { %417 = vmax.xlane.f32.xlu0 %v416_v60 }
 0x42d   :  { %486 = vrot.lane.b32.xlu1 %v3026_v42, %s2762_s7 }
 0x431   :  { %536 = vrot.lane.b32.xlu1 %v3024_v39, %s2763_s20 }
 0x4a9   :  { %v415_v61 = vpop.xlane.xlu1 %414 }
 0x4aa   :  { %v419_v62 = vsub.f32 %v358_v50, %v415_v61 }
 0x4ab   :  { %v418_v63 = vpop.xlane.xlu0 %417 }
 0x4ac   :  { %v421_v0 = vmul.f32 1.442695, %v419_v62  ;;  %v420_v1 = vsub.f32 %v407_v54, %v418_v63 }
 0x4ad   :  { %v487_v2 = vpop.permute.xlu1 %486 }
 0x4ae   :  { %2450 = vpow2.f32 %v421_v0  ;;  %v423_v3 = vmul.f32 1.442695, %v420_v1  ;;  %v492_v4 = vsel %vm442_vm4, %v487_v2, 0 }
 0x4af   :  { %2244 = vmatpush3.bf16.msra.mxu0 %v492_v4 }
 0x4b0   :  { %2452 = vpow2.f32 %v423_v3  ;;  %2255 = vmatprep.subr.bf16.mxu0 %v2759_v15 }
 0x4b1   :  { %v537_v9 = vpop.permute.xlu1 %536 }
 0x4b2   :  { %v542_v21 = vsel %vm316_vm2, %v537_v9, 0  ;;  %v2427_v9 = vld [vmem:[%s3362_s6 + $0x8] sm:$0xff]  }
 0x4b8   :  { %v2451_v5 = vpop.eup %2450 }
 0x4b9   :  { %v425_v6 = vsel %vm412_vm3, %v2451_v5, 0.0 }
 0x4ba   :  { %v2453_v7 = vpop.eup %2452  ;;  %426 = vadd.xlane.f32.xlu0 %v425_v6 }
 0x4bb   :  { %v428_v8 = vsel %vm412_vm3, %v2453_v7, 0.0 }
 0x4bc   :  { %429 = vadd.xlane.f32.xlu1 %v428_v8  ;;  %v2426_v8 = vld [vmem:[%s3362_s6] sm:$0xff]  }
 0x4cd   :  { %586 = vrot.lane.b32.xlu1 %v3026_v42, %s2763_s20 }
 0x4d0   :  { %437 = vrot.lane.b32.xlu0 %v3024_v39, %s2762_s7 }
 0x4d1   :  { %584 = vrot.lane.b32.xlu1 %v3026_v42, %s2764_s22 }
 0x4d4   :  { %534 = vrot.lane.b32.xlu0 %v3024_v39, %s2764_s22 }
 0x547   :  { %v427_v10 = vpop.xlane.xlu0 %426 }
 0x548   :  { %2454 = vrcp.f32 %v427_v10 }
 0x549   :  { %v430_v11 = vpop.xlane.xlu1 %429 }
 0x54a   :  { %2456 = vrcp.f32 %v430_v11 }
 0x54b   :  { %v438_v12 = vpop.permute.xlu0 %437 }
 0x54c   :  { %v444_v13 = vsel %vm442_vm4, %v438_v12, 0 }
 0x54d   :  { %2238 = vmatpush3.bf16.msra.mxu1 %v444_v13  ;;  %v587_v20 = vpop.permute.xlu1 %586 }
 0x54e   :  { %2249 = vmatprep.subr.bf16.mxu1 %v2759_v15  ;;  %v592_v23 = vsel %vm316_vm2, %v587_v20, 0 }
 0x54f   :  { %v535_v24 = vpop.permute.xlu0 %534 }
 0x551   :  { %v585_v25 = vpop.permute.xlu1 %584 }
 0x552   :  { %v2455_v14 = vpop.eup %2454 }
 0x553   :  { %v433_v16 = vmul.f32 %v2455_v14, %v2451_v5 }
 0x554   :  { %v2457_v17 = vpop.eup %2456 }
 0x555   :  { %v434_v18 = vmul.f32 %v2457_v17, %v2453_v7  ;;  %v435_v19 = vpack.c.bf16 %v433_v16, %v433_v16 }
 0x557   :  { %2240 = vmatmul.mubr.msk.bf16.vlgmr.msra.gmra.mrb[4].mxu1 %vm412_vm3, %v435_v19  ;;  %v436_v22 = vpack.c.bf16 %v434_v18, %v434_v18 }
 0x558   :  { %2250 = vmatpush3.bf16.xpose.msra.mxu1 %v542_v21  ;;  %2251 = vmatprep.mubr.msk.bf16.mxu1 %vm2760_vm1, %v2759_v15 }
 0x559   :  { %2246 = vmatmul.mubr.msk.bf16.vlgmr.msra.gmra.mrb[8].mxu0 %vm412_vm3, %v436_v22  ;;  %2261 = vmatprep.subr.bf16.mxu1 %v2759_v15 }
 0x55a   :  { %2256 = vmatpush3.bf16.xpose.msra.mxu0 %v592_v23  ;;  %2257 = vmatprep.mubr.msk.bf16.mxu0 %vm2760_vm1, %v2759_v15 }
 0x55b   :  { %2267 = vmatprep.subr.bf16.mxu0 %v2759_v15 }
 0x55f   :  { %2252 = vmatmul.mubr.msk.bf16.vlgmr.msra.gmra.mrb[8].mxu1 %vm316_vm2, %v535_v24 }
 0x560   :  { %2263 = vmatprep.mubr.msk.bf16.mxu1 %vm2760_vm1, %v2759_v15 }
 0x561   :  { %2258 = vmatmul.mubr.msk.bf16.vlgmr.msra.gmra.mrb[12].mxu0 %vm316_vm2, %v585_v25 }
 0x562   :  { %2269 = vmatprep.mubr.msk.bf16.mxu0 %vm2760_vm1, %v2759_v15 }
 0x62a   :  { %v3086_v26 = vpop.f32.mrb[4].mxu1 }
 0x62b   :  { %v2241_v27 = vpop.f32.mrb[5].mxu1 }
 0x62c   :  { %v483_v28 = vpop.f32.mrb[6].mxu1  ;;  %v3088_v29 = vpop.f32.mrb[8].mxu0  ;;  %v2080_v27 = vld [vmem:[#allocation10] ss:$0 sm:$0xff] }
 0x62d   :  { %v2242_v30 = vpop.f32.mrb[7].mxu1  ;;  %v2247_v33 = vpop.f32.mrb[9].mxu0 }
 0x62e   :  { %v531_v34 = vpop.f32.mrb[10].mxu0 }
 0x62f   :  { %v2248_v35 = vpop.f32.mrb[11].mxu0 }
 0x632   :  { %v578_v36 = vpop.f32.mrb[8].mxu1 }
 0x633   :  { %v579_v37 = vadd.f32 %v3044_v47, %v578_v36  ;;  %v2253_v38 = vpop.f32.mrb[9].mxu1 }
 0x634   :  { %v581_v40 = vpop.f32.mrb[10].mxu1  ;;  %v628_v41 = vpop.f32.mrb[12].mxu0 }
 0x635   :  { %v629_v43 = vadd.f32 %v3046_v49, %v628_v41  ;;  %v2254_v44 = vpop.f32.mrb[11].mxu1  ;;  %v2259_v45 = vpop.f32.mrb[13].mxu0  ;;  %v634_v46 = vsel %vm412_vm3, %v579_v37, -inf }
 0x636   :  { %635 = vmax.xlane.f32.xlu0 %v634_v46  ;;  %v631_v48 = vpop.f32.mrb[14].mxu0 }
 0x637   :  { %v2260_v50 = vpop.f32.mrb[15].mxu0  ;;  %v637_v51 = vsel %vm412_vm3, %v629_v43, -inf }
 0x638   :  { %638 = vmax.xlane.f32.xlu1 %v637_v51 }
 0x649   :  { %706 = vrot.lane.b32.xlu1 %v3026_v42, %s2765_s28 }
 0x6c3   :  { %v636_v52 = vpop.xlane.xlu0 %635 }
 0x6c4   :  { %v640_v53 = vsub.f32 %v579_v37, %v636_v52  ;;  %v2429_v52 = vld [vmem:[%s3366_s10 + $0x8] sm:$0xff]  }
 0x6c5   :  { %v639_v54 = vpop.xlane.xlu1 %638 }
 0x6c6   :  { %v642_v55 = vmul.f32 1.442695, %v640_v53  ;;  %v641_v56 = vsub.f32 %v629_v43, %v639_v54 }
 0x6c8   :  { %2458 = vpow2.f32 %v642_v55  ;;  %v644_v57 = vmul.f32 1.442695, %v641_v56 }
 0x6c9   :  { %v707_v58 = vpop.permute.xlu1 %706 }
 0x6ca   :  { %2460 = vpow2.f32 %v644_v57  ;;  %v712_v59 = vsel %vm442_vm4, %v707_v58, 0 }
 0x6cb   :  { %2268 = vmatpush3.bf16.msra.mxu0 %v712_v59 }
 0x6cc   :  { %2281 = vmatprep.subr.bf16.mxu0 %v2759_v15 }
 0x6d2   :  { %v2459_v60 = vpop.eup %2458 }
 0x6d3   :  { %v646_v61 = vsel %vm412_vm3, %v2459_v60, 0.0 }
 0x6d4   :  { %v2461_v62 = vpop.eup %2460  ;;  %647 = vadd.xlane.f32.xlu0 %v646_v61  ;;  %v2084_v61 = vld [vmem:[#allocation11] ss:$0 sm:$0xff] }
 0x6d5   :  { %v649_v42 = vsel %vm412_vm3, %v2461_v62, 0.0 }
 0x6d8   :  { %650 = vadd.xlane.f32.xlu0 %v649_v42 }
 0x6ee   :  { %658 = vrot.lane.b32.xlu0 %v3024_v39, %s2765_s28 }
 0x761   :  { %v648_v63 = vpop.xlane.xlu0 %647 }
 0x762   :  { %2462 = vrcp.f32 %v648_v63 }
 0x765   :  { %v651_v0 = vpop.xlane.xlu0 %650 }
 0x766   :  { %2464 = vrcp.f32 %v651_v0  ;;  %v2085_v0 = vld [vmem:[#allocation13] ss:$0 sm:$0xff] }
 0x769   :  { %v659_v1 = vpop.permute.xlu0 %658 }
 0x76a   :  { %v664_v2 = vsel %vm442_vm4, %v659_v1, 0 }
 0x76b   :  { %2262 = vmatpush3.bf16.msra.mxu1 %v664_v2 }
 0x76c   :  { %v2463_v3 = vpop.eup %2462  ;;  %2273 = vmatprep.subr.bf16.mxu1 %v2759_v15 }
 0x76d   :  { %v654_v4 = vmul.f32 %v2463_v3, %v2459_v60 }
 0x76f   :  { %v656_v5 = vpack.c.bf16 %v654_v4, %v654_v4 }
 0x770   :  { %v2465_v6 = vpop.eup %2464 }
 0x771   :  { %v655_v7 = vmul.f32 %v2465_v6, %v2461_v62  ;;  %2264 = vmatmul.mubr.msk.bf16.vlgmr.msra.gmra.mrb[12].mxu1 %vm412_vm3, %v656_v5  ;;  %v2430_v5 = vld [vmem:[%s3368_s12] sm:$0xff]   ;;  %v2431_v6 = vld [vmem:[%s3368_s12 + $0x8] sm:$0xff]  }
 0x772   :  { %2277 = vmatprep.mubr.msk.bf16.mxu1 %vm2760_vm1, %v2759_v15  ;;  %2274 = vmatpush3.bf16.msra.mxu1 %v2426_v8  ;;  %v2086_v8 = vld [vmem:[#allocation14] ss:$0 sm:$0xff] }
 0x773   :  { %v657_v39 = vpack.c.bf16 %v655_v7, %v655_v7  ;;  %2275 = vmatprep.subr.bf16.mxu1 %v2759_v15  ;;  %v2432_v7 = vld [vmem:[%s3368_s12 + $0x10] sm:$0xff]  }
 0x775   :  { %2270 = vmatmul.mubr.msk.bf16.vlgmr.msra.gmra.mrb[16].mxu0 %vm412_vm3, %v657_v39  ;;  %v2433_v39 = vld [vmem:[%s3368_s12 + $0x18] sm:$0xff]  }
 0x776   :  { %2285 = vmatprep.mubr.msk.bf16.mxu0 %vm2760_vm1, %v2759_v15  ;;  %2276 = vmatpush3.bf16.msra.mxu1 %v2427_v9 }
 0x777   :  { %2289 = vmatprep.subr.bf16.mxu1 %v2759_v15 }
 0x844   :  { %v700_v10 = vpop.f32.mrb[12].mxu1 }
 0x845   :  { %v2265_v11 = vpop.f32.mrb[13].mxu1 }
 0x846   :  { %v703_v12 = vpop.f32.mrb[14].mxu1 }
 0x847   :  { %v2266_v13 = vpop.f32.mrb[15].mxu1 }
 0x848   :  { %v748_v14 = vpop.f32.mrb[16].mxu0 }
 0x849   :  { %v2414_v16 = vpack.i.bf16 %v748_v14, %v700_v10  ;;  %v2271_v17 = vpop.f32.mrb[17].mxu0 }
 0x84a   :  { %v751_v18 = vpop.f32.mrb[18].mxu0 }
 0x84b   :  { %2415 = vrot.lane.b32.xlu1 %v2414_v16, %s2747_s23  ;;  %v2272_v19 = vpop.f32.mrb[19].mxu0 }
 0x8bd   :  { %v2416_v20 = vpop.permute.xlu1 %2415 }
 0x8be   :  { %v2418_v21 = vunpack.i.h.bf16 %v2416_v20  ;;  %v2417_v22 = vunpack.i.l.bf16 %v2416_v20 }
 0x8c0   :  { %v763_v23 = vsel %vm316_vm2, %v3088_v29, %v2418_v21  ;;  %v762_v24 = vsel %vm316_vm2, %v3086_v26, %v2417_v22 }
 0x8c1   :  { %v764_v25 = vpack.c.bf16 %v763_v23, %v762_v24 }
 0x8c3   :  { %2278 = vmatmul.mubr.msk.bf16.vlgmr.msra.gmra.mrb[16].mxu1 %vm185_vm0, %v764_v25 }
 0x8c4   :  { %2297 = vmatprep.mubr.msk.bf16.mxu1 %vm2760_vm1, %v2759_v15  ;;  %2290 = vmatpush3.bf16.msra.mxu1 %v2430_v5 }
 0x8c5   :  { %2291 = vmatprep.subr.bf16.mxu1 %v2759_v15 }
 0x8c8   :  { %2292 = vmatpush3.bf16.msra.mxu1 %v2431_v6 }
 0x8c9   :  { %2293 = vmatprep.subr.bf16.mxu1 %v2759_v15 }
 0x8cc   :  { %2294 = vmatpush3.bf16.msra.mxu1 %v2432_v7 }
 0x8cd   :  { %2295 = vmatprep.subr.bf16.mxu1 %v2759_v15 }
 0x8d0   :  { %2296 = vmatpush3.bf16.msra.mxu1 %v2433_v39 }
 0x8d1   :  { %2315 = vmatprep.subr.bf16.mxu1 %v2759_v15 }
 0x996   :  { %v825_v28 = vpop.f32.mrb[16].mxu1 }
 0x997   :  { %v826_v30 = vadd.f32 %v2080_v27, %v825_v28  ;;  %v2279_v33 = vpop.f32.mrb[17].mxu1 }
 0x998   :  { %v828_v34 = vpop.f32.mrb[18].mxu1 }
 0x999   :  { %v829_v35 = vadd.f32 %v2080_v27, %v828_v34  ;;  %v2280_v36 = vpop.f32.mrb[19].mxu1  ;;  %v832_v37 = vadd.f32 %v826_v30, %v3015_v31 }
 0x99b   :  { %v836_v29 = vsel %vm185_vm0, %v832_v37, 0.0  ;;  %v833_v38 = vadd.f32 %v829_v35, %v3017_v32  ;;  %v2428_v32 = vld [vmem:[%s3366_s10] sm:$0xff]  }
 0x99c   :  { %837 = vadd.xlane.f32.xlu1 %v836_v29  ;;  %2282 = vmatpush3.bf16.msra.mxu0 %v2428_v32 }
 0x99d   :  { %v839_v26 = vsel %vm185_vm0, %v833_v38, 0.0  ;;  %2283 = vmatprep.subr.bf16.mxu0 %v2759_v15 }
 0x99e   :  { %840 = vadd.xlane.f32.xlu0 %v839_v26 }
 0x9a0   :  { %2284 = vmatpush3.bf16.msra.mxu0 %v2429_v52 }
 0x9a1   :  { %2301 = vmatprep.subr.bf16.mxu0 %v2759_v15 }
 0xa29   :  { %v838_v40 = vpop.xlane.xlu1 %837 }
 0xa2a   :  { %v842_v41 = vmul.f32 0.03125, %v838_v40 }
 0xa2b   :  { %v841_v43 = vpop.xlane.xlu0 %840 }
 0xa2c   :  { %v844_v44 = vsub.f32 %v832_v37, %v842_v41  ;;  %v843_v45 = vmul.f32 0.03125, %v841_v43 }
 0xa2e   :  { %v845_v46 = vsub.f32 %v833_v38, %v843_v45  ;;  %v846_v48 = vmul.f32 %v844_v44, %v844_v44  ;;  %v2090_v38 = vld [vmem:[#allocation16] ss:$0 sm:$0xff] }
 0xa30   :  { %v848_v50 = vsel %vm185_vm0, %v846_v48, 0.0  ;;  %v847_v51 = vmul.f32 %v845_v46, %v845_v46 }
 0xa31   :  { %849 = vadd.xlane.f32.xlu0 %v848_v50 }
 0xa32   :  { %v851_v31 = vsel %vm185_vm0, %v847_v51, 0.0 }
 0xa35   :  { %852 = vadd.xlane.f32.xlu0 %v851_v31 }
 0xabe   :  { %v850_v53 = vpop.xlane.xlu0 %849 }
 0xabf   :  { %v854_v54 = vmul.f32 0.03125, %v850_v53 }
 0xac1   :  { %v856_v55 = vadd.f32 1e-12, %v854_v54 }
 0xac2   :  { %v853_v56 = vpop.xlane.xlu0 %852 }
 0xac3   :  { %2466 = vrsqrt.f32 %v856_v55  ;;  %v855_v57 = vmul.f32 0.03125, %v853_v56 }
 0xac5   :  { %v857_v58 = vadd.f32 1e-12, %v855_v57 }
 0xac7   :  { %2468 = vrsqrt.f32 %v857_v58 }
 0xacd   :  { %v2467_v59 = vpop.eup %2466 }
 0xace   :  { %v860_v60 = vmul.f32 %v2467_v59, %v844_v44 }
 0xad0   :  { %v868_v42 = vmul.f32 %v2084_v61, %v860_v60  ;;  %v2434_v60 = vld [vmem:[%s3360_s4 + $0x10] sm:$0xff]  }
 0xad1   :  { %v2469_v62 = vpop.eup %2468 }
 0xad2   :  { %v861_v63 = vmul.f32 %v2469_v62, %v845_v46  ;;  %v876_v2 = vadd.f32 %v2085_v0, %v868_v42 }
 0xad4   :  { %v869_v1 = vmul.f32 %v2084_v61, %v861_v63  ;;  %v2435_v61 = vld [vmem:[%s3360_s4 + $0x18] sm:$0xff]  }
 0xad6   :  { %v877_v3 = vadd.f32 %v2085_v0, %v869_v1 }
 0xad8   :  { %v878_v4 = vpack.c.bf16 %v877_v3, %v876_v2 }
 0xada   :  { %2286 = vmatmul.mubr.msk.bf16.vlgmr.msra.gmra.mrb[20].mxu0 %vm185_vm0, %v878_v4  ;;  %v2096_v4 = vld [vmem:[%s3370_s14] ss:$0 sm:$0xff] }
 0xadb   :  { %2305 = vmatprep.mubr.msk.bf16.mxu0 %vm2760_vm1, %v2759_v15  ;;  %2302 = vmatpush3.bf16.msra.mxu0 %v2434_v60 }
 0xadc   :  { %2303 = vmatprep.subr.bf16.mxu0 %v2759_v15 }
 0xadf   :  { %2304 = vmatpush3.bf16.msra.mxu0 %v2435_v61 }
 0xae0   :  { %2309 = vmatprep.subr.bf16.mxu0 %v2759_v15 }
 0xbad   :  { %v939_v9 = vpop.f32.mrb[20].mxu0 }
 0xbae   :  { %v940_v10 = vadd.f32 %v2086_v8, %v939_v9  ;;  %v2287_v11 = vpop.f32.mrb[21].mxu0 }
 0xbaf   :  { %v942_v12 = vpop.f32.mrb[22].mxu0 }
 0xbb0   :  { %v948_v13 = vmul.f32 0.044715, %v940_v10  ;;  %v943_v14 = vadd.f32 %v2086_v8, %v942_v12  ;;  %v2288_v16 = vpop.f32.mrb[23].mxu0  ;;  %v946_v33 = vmul.f32 0.5, %v940_v10  ;;  %v2097_v8 = vld [vmem:[%s3371_s15] ss:$0 sm:$0xff] }
 0xbb2   :  { %v950_v17 = vmul.f32 %v948_v13, %v940_v10  ;;  %v949_v18 = vmul.f32 0.044715, %v943_v14  ;;  %v947_v34 = vmul.f32 0.5, %v943_v14  ;;  %v2102_v13 = vld [vmem:[#allocation8 + $0x1] ss:$0 sm:$0xff] }
 0xbb4   :  { %v952_v19 = vmul.f32 %v950_v17, %v940_v10  ;;  %v951_v20 = vmul.f32 %v949_v18, %v943_v14 }
 0xbb6   :  { %v954_v21 = vadd.f32 %v952_v19, %v940_v10  ;;  %v953_v22 = vmul.f32 %v951_v20, %v943_v14 }
 0xbb8   :  { %v956_v23 = vmul.f32 0.7978846, %v954_v21  ;;  %v955_v24 = vadd.f32 %v953_v22, %v943_v14 }
 0xbba   :  { %2470 = vtanh.f32 %v956_v23  ;;  %v957_v25 = vmul.f32 0.7978846, %v955_v24 }
 0xbbc   :  { %2472 = vtanh.f32 %v957_v25 }
 0xbc4   :  { %v2471_v27 = vpop.eup %2470 }
 0xbc5   :  { %v960_v28 = vadd.f32 1.0, %v2471_v27 }
 0xbc6   :  { %v2473_v30 = vpop.eup %2472 }
 0xbc7   :  { %v961_v35 = vadd.f32 1.0, %v2473_v30  ;;  %v962_v36 = vmul.f32 %v960_v28, %v946_v33 }
 0xbc9   :  { %v963_v37 = vmul.f32 %v961_v35, %v947_v34 }
 0xbcb   :  { %v964_v29 = vpack.c.bf16 %v963_v37, %v962_v36 }
 0xbcd   :  { %2298 = vmatmul.mubr.msk.bf16.vlgmr.msra.gmra.mrb[20].mxu1 %vm1004_vm5, %v964_v29 }
 0xbce   :  { %2317 = vmatprep.mubr.msk.bf16.mxu1 %vm2760_vm1, %v2759_v15 }
 0xca0   :  { %v1042_v26 = vpop.f32.mrb[20].mxu1 }
 0xca1   :  { %v1043_v40 = vadd.f32 %v2090_v38, %v1042_v26  ;;  %v2299_v41 = vpop.f32.mrb[21].mxu1 }
 0xca2   :  { %v1045_v43 = vpop.f32.mrb[22].mxu1 }
 0xca3   :  { %v1046_v44 = vadd.f32 %v2090_v38, %v1045_v43  ;;  %v2300_v45 = vpop.f32.mrb[23].mxu1  ;;  %v1049_v46 = vadd.f32 %v1043_v40, %v876_v2 }
 0xca5   :  { %v1053_v48 = vsel %vm185_vm0, %v1049_v46, 0.0  ;;  %v1050_v50 = vadd.f32 %v1046_v44, %v877_v3 }
 0xca6   :  { %1054 = vadd.xlane.f32.xlu1 %v1053_v48 }
 0xca7   :  { %v1056_v51 = vsel %vm185_vm0, %v1050_v50, 0.0 }
 0xca8   :  { %1057 = vadd.xlane.f32.xlu0 %v1056_v51 }
 0xd33   :  { %v1055_v31 = vpop.xlane.xlu1 %1054 }
 0xd34   :  { %v1059_v32 = vmul.f32 0.03125, %v1055_v31 }
 0xd35   :  { %v1058_v52 = vpop.xlane.xlu0 %1057 }
 0xd36   :  { %v1061_v53 = vsub.f32 %v1049_v46, %v1059_v32  ;;  %v1060_v54 = vmul.f32 0.03125, %v1058_v52 }
 0xd38   :  { %v1062_v55 = vsub.f32 %v1050_v50, %v1060_v54  ;;  %v1063_v56 = vmul.f32 %v1061_v53, %v1061_v53 }
 0xd3a   :  { %v1065_v57 = vsel %vm185_vm0, %v1063_v56, 0.0  ;;  %v1064_v58 = vmul.f32 %v1062_v55, %v1062_v55 }
 0xd3b   :  { %1066 = vadd.xlane.f32.xlu1 %v1065_v57 }
 0xd3c   :  { %v1068_v59 = vsel %vm185_vm0, %v1064_v58, 0.0 }
 0xd3d   :  { %1069 = vadd.xlane.f32.xlu0 %v1068_v59 }
 0xdc8   :  { %v1067_v62 = vpop.xlane.xlu1 %1066 }
 0xdc9   :  { %v1071_v42 = vmul.f32 0.03125, %v1067_v62 }
 0xdca   :  { %v1070_v63 = vpop.xlane.xlu0 %1069 }
 0xdcb   :  { %v1073_v0 = vadd.f32 1e-12, %v1071_v42  ;;  %v1072_v1 = vmul.f32 0.03125, %v1070_v63 }
 0xdcd   :  { %2474 = vrsqrt.f32 %v1073_v0  ;;  %v1074_v2 = vadd.f32 1e-12, %v1072_v1 }
 0xdcf   :  { %2476 = vrsqrt.f32 %v1074_v2 }
 0xdd7   :  { %v2475_v3 = vpop.eup %2474 }
 0xdd8   :  { %v1077_v5 = vmul.f32 %v2475_v3, %v1061_v53 }
 0xdd9   :  { %v2477_v6 = vpop.eup %2476 }
 0xdda   :  { %v1085_v7 = vmul.f32 %v2096_v4, %v1077_v5  ;;  %v1078_v39 = vmul.f32 %v2477_v6, %v1062_v55 }
 0xddc   :  { %v1086_v9 = vmul.f32 %v2096_v4, %v1078_v39  ;;  %v3180_v10 = vadd.f32 %v2097_v8, %v1085_v7 }
 0xdde   :  { %v3182_v11 = vadd.f32 %v2097_v8, %v1086_v9 }
 0xde0   :  { %v1095_v12 = vpack.c.bf16 %v3182_v11, %v3180_v10 }
 0xde2   :  { %2306 = vmatmul.mubr.msk.bf16.vlgmr.msra.gmra.mrb[24].mxu0 %vm185_vm0, %v1095_v12 }
 0xde3   :  { %2311 = vmatprep.mubr.msk.bf16.mxu0 %vm2760_vm1, %v2759_v15 }
 0xeb5   :  { %v1158_v14 = vpop.f32.mrb[24].mxu0 }
 0xeb6   :  { %v1159_v16 = vadd.f32 %v2102_v13, %v1158_v14  ;;  %v2307_v17 = vpop.f32.mrb[25].mxu0 }
 0xeb7   :  { %v1161_v18 = vpop.f32.mrb[26].mxu0 }
 0xeb8   :  { %v3189_v19 = vpack.c.bf16 %v1159_v16, %v1159_v16  ;;  %v1162_v20 = vadd.f32 %v2102_v13, %v1161_v18  ;;  %v2308_v21 = vpop.f32.mrb[27].mxu0 }
 0xeba   :  { %v3191_v22 = vpack.c.bf16 %v1162_v20, %v1162_v20  ;;  %1168 = vrot.lane.b32.xlu1 %v3189_v19, %s2761_s5 }
 0xebc   :  { %1217 = vrot.lane.b32.xlu0 %v3191_v22, %s2761_s5 }
 0xf2c   :  { %v1169_v23 = vpop.permute.xlu1 %1168 }
 0xf2d   :  { %v1174_v24 = vsel %vm316_vm2, %v1169_v23, 0 }
 0xf2e   :  { %2310 = vmatpush3.bf16.xpose.msra.mxu0 %v1174_v24  ;;  %v1218_v25 = vpop.permute.xlu0 %1217 }
 0xf2f   :  { %v1223_v27 = vsel %vm316_vm2, %v1218_v25, 0  ;;  %2321 = vmatprep.subr.bf16.mxu0 %v2759_v15 }
 0xf30   :  { %2316 = vmatpush3.bf16.xpose.msra.mxu1 %v1223_v27 }
 0xf31   :  { %2327 = vmatprep.subr.bf16.mxu1 %v2759_v15 }
 0xf35   :  { %2312 = vmatmul.mubr.msk.bf16.vlgmr.msra.gmra.mrb[28].mxu0 %vm316_vm2, %v3189_v19 }
 0xf36   :  { %2323 = vmatprep.mubr.msk.bf16.mxu0 %vm2760_vm1, %v2759_v15 }
 0xf37   :  { %2318 = vmatmul.mubr.msk.bf16.vlgmr.msra.gmra.mrb[24].mxu1 %vm316_vm2, %v3191_v22 }
 0xf38   :  { %2329 = vmatprep.mubr.msk.bf16.mxu1 %vm2760_vm1, %v2759_v15 }
0x1008   :  { %v1210_v28 = vpop.f32.mrb[28].mxu0 }
0x1009   :  { %v1211_v30 = vadd.f32 %v3044_v47, %v1210_v28  ;;  %v2313_v33 = vpop.f32.mrb[29].mxu0 }
0x100a   :  { %v1213_v34 = vpop.f32.mrb[30].mxu0  ;;  %v1259_v35 = vpop.f32.mrb[24].mxu1 }
0x100b   :  { %v1260_v36 = vadd.f32 %v3046_v49, %v1259_v35  ;;  %v2314_v37 = vpop.f32.mrb[31].mxu0  ;;  %v2319_v29 = vpop.f32.mrb[25].mxu1  ;;  %v1265_v38 = vsel %vm412_vm3, %v1211_v30, -inf }
0x100c   :  { %v1262_v26 = vpop.f32.mrb[26].mxu1  ;;  %1266 = vmax.xlane.f32.xlu1 %v1265_v38 }
0x100d   :  { %v2320_v40 = vpop.f32.mrb[27].mxu1  ;;  %v1268_v41 = vsel %vm412_vm3, %v1260_v36, -inf }
0x100e   :  { %1269 = vmax.xlane.f32.xlu0 %v1268_v41 }
0x101d   :  { %1289 = vrot.lane.b32.xlu1 %v3189_v19, %s2762_s7 }
0x1099   :  { %v1267_v43 = vpop.xlane.xlu1 %1266 }
0x109a   :  { %v1271_v44 = vsub.f32 %v1211_v30, %v1267_v43 }
0x109b   :  { %v1270_v45 = vpop.xlane.xlu0 %1269 }
0x109c   :  { %v1273_v46 = vmul.f32 1.442695, %v1271_v44  ;;  %v1272_v48 = vsub.f32 %v1260_v36, %v1270_v45 }
0x109d   :  { %v1290_v50 = vpop.permute.xlu1 %1289 }
0x109e   :  { %2478 = vpow2.f32 %v1273_v46  ;;  %v1275_v51 = vmul.f32 1.442695, %v1272_v48  ;;  %v1295_v31 = vsel %vm442_vm4, %v1290_v50, 0 }
0x109f   :  { %2322 = vmatpush3.bf16.msra.mxu0 %v1295_v31 }
0x10a0   :  { %2480 = vpow2.f32 %v1275_v51  ;;  %2333 = vmatprep.subr.bf16.mxu0 %v2759_v15 }
0x10a8   :  { %v2479_v32 = vpop.eup %2478 }
0x10a9   :  { %v1277_v52 = vsel %vm412_vm3, %v2479_v32, 0.0 }
0x10aa   :  { %v2481_v53 = vpop.eup %2480  ;;  %1278 = vadd.xlane.f32.xlu1 %v1277_v52  ;;  %v2436_v52 = vld [vmem:[%s3362_s6 + $0x10] sm:$0xff]  }
0x10ab   :  { %v1280_v54 = vsel %vm412_vm3, %v2481_v53, 0.0 }
0x10ac   :  { %1281 = vadd.xlane.f32.xlu0 %v1280_v54 }
0x10bb   :  { %1387 = vrot.lane.b32.xlu1 %v3189_v19, %s2763_s20 }
0x10bf   :  { %1437 = vrot.lane.b32.xlu1 %v3191_v22, %s2763_s20 }
0x10c2   :  { %1337 = vrot.lane.b32.xlu0 %v3191_v22, %s2762_s7 }
0x10c3   :  { %1385 = vrot.lane.b32.xlu1 %v3189_v19, %s2764_s22 }
0x10c6   :  { %1435 = vrot.lane.b32.xlu0 %v3191_v22, %s2764_s22 }
0x1137   :  { %v1279_v55 = vpop.xlane.xlu1 %1278 }
0x1138   :  { %2482 = vrcp.f32 %v1279_v55 }
0x1139   :  { %v1282_v56 = vpop.xlane.xlu0 %1281 }
0x113a   :  { %2484 = vrcp.f32 %v1282_v56 }
0x113b   :  { %v1388_v59 = vpop.permute.xlu1 %1387 }
0x113c   :  { %v1393_v1 = vsel %vm316_vm2, %v1388_v59, 0 }
0x113d   :  { %v1338_v57 = vpop.permute.xlu0 %1337 }
0x113e   :  { %v1343_v58 = vsel %vm442_vm4, %v1338_v57, 0 }
0x113f   :  { %2328 = vmatpush3.bf16.msra.mxu1 %v1343_v58  ;;  %v1438_v0 = vpop.permute.xlu1 %1437 }
0x1140   :  { %2339 = vmatprep.subr.bf16.mxu1 %v2759_v15  ;;  %v1443_v3 = vsel %vm316_vm2, %v1438_v0, 0 }
0x1141   :  { %v1436_v5 = vpop.permute.xlu0 %1435 }
0x1142   :  { %v2483_v60 = vpop.eup %2482 }
0x1143   :  { %v1285_v61 = vmul.f32 %v2483_v60, %v2479_v32  ;;  %v1386_v4 = vpop.permute.xlu1 %1385 }
0x1144   :  { %v2485_v62 = vpop.eup %2484 }
0x1145   :  { %v1286_v42 = vmul.f32 %v2485_v62, %v2481_v53  ;;  %v1287_v63 = vpack.c.bf16 %v1285_v61, %v1285_v61  ;;  %v2437_v53 = vld [vmem:[%s3362_s6 + $0x18] sm:$0xff]  }
0x1147   :  { %2324 = vmatmul.mubr.msk.bf16.vlgmr.msra.gmra.mrb[32].mxu0 %vm412_vm3, %v1287_v63  ;;  %v1288_v2 = vpack.c.bf16 %v1286_v42, %v1286_v42 }
0x1148   :  { %2334 = vmatpush3.bf16.xpose.msra.mxu0 %v1393_v1  ;;  %2335 = vmatprep.mubr.msk.bf16.mxu0 %vm2760_vm1, %v2759_v15 }
0x1149   :  { %2330 = vmatmul.mubr.msk.bf16.vlgmr.msra.gmra.mrb[28].mxu1 %vm412_vm3, %v1288_v2  ;;  %2345 = vmatprep.subr.bf16.mxu0 %v2759_v15 }
0x114a   :  { %2340 = vmatpush3.bf16.xpose.msra.mxu1 %v1443_v3  ;;  %2341 = vmatprep.mubr.msk.bf16.mxu1 %vm2760_vm1, %v2759_v15 }
0x114b   :  { %2351 = vmatprep.subr.bf16.mxu1 %v2759_v15 }
0x114f   :  { %2336 = vmatmul.mubr.msk.bf16.vlgmr.msra.gmra.mrb[36].mxu0 %vm316_vm2, %v1386_v4  ;;  %v2118_v4 = vld [vmem:[#allocation10 + $0x1] ss:$0 sm:$0xff] }
0x1150   :  { %2347 = vmatprep.mubr.msk.bf16.mxu0 %vm2760_vm1, %v2759_v15 }
0x1151   :  { %2342 = vmatmul.mubr.msk.bf16.vlgmr.msra.gmra.mrb[32].mxu1 %vm316_vm2, %v1436_v5 }
0x1152   :  { %2353 = vmatprep.mubr.msk.bf16.mxu1 %vm2760_vm1, %v2759_v15 }
0x121a   :  { %v3247_v6 = vpop.f32.mrb[32].mxu0 }
0x121b   :  { %v2325_v7 = vpop.f32.mrb[33].mxu0 }
0x121c   :  { %v1334_v39 = vpop.f32.mrb[34].mxu0  ;;  %v3249_v8 = vpop.f32.mrb[28].mxu1 }
0x121d   :  { %v2326_v9 = vpop.f32.mrb[35].mxu0  ;;  %v2331_v12 = vpop.f32.mrb[29].mxu1 }
0x121e   :  { %v1382_v13 = vpop.f32.mrb[30].mxu1 }
0x121f   :  { %v2332_v14 = vpop.f32.mrb[31].mxu1 }
0x1222   :  { %v1429_v16 = vpop.f32.mrb[36].mxu0 }
0x1223   :  { %v1430_v17 = vadd.f32 %v3044_v47, %v1429_v16  ;;  %v2337_v18 = vpop.f32.mrb[37].mxu0 }
0x1224   :  { %v1432_v20 = vpop.f32.mrb[38].mxu0  ;;  %v1479_v21 = vpop.f32.mrb[32].mxu1 }
0x1225   :  { %v1480_v23 = vadd.f32 %v3046_v49, %v1479_v21  ;;  %v2338_v24 = vpop.f32.mrb[39].mxu0  ;;  %v2343_v25 = vpop.f32.mrb[33].mxu1  ;;  %v1485_v27 = vsel %vm412_vm3, %v1430_v17, -inf }
0x1226   :  { %v1482_v28 = vpop.f32.mrb[34].mxu1  ;;  %1486 = vmax.xlane.f32.xlu1 %v1485_v27 }
0x1227   :  { %v2344_v30 = vpop.f32.mrb[35].mxu1  ;;  %v1488_v33 = vsel %vm412_vm3, %v1480_v23, -inf }
0x1228   :  { %1489 = vmax.xlane.f32.xlu0 %v1488_v33  ;;  %v2439_v30 = vld [vmem:[%s3366_s10 + $0x18] sm:$0xff]  }
0x1237   :  { %1509 = vrot.lane.b32.xlu1 %v3189_v19, %s2765_s28 }
0x12b3   :  { %v1487_v34 = vpop.xlane.xlu1 %1486 }
0x12b4   :  { %v1491_v47 = vsub.f32 %v1430_v17, %v1487_v34 }
0x12b5   :  { %v1490_v35 = vpop.xlane.xlu0 %1489 }
0x12b6   :  { %v1493_v36 = vmul.f32 1.442695, %v1491_v47  ;;  %v1492_v37 = vsub.f32 %v1480_v23, %v1490_v35 }
0x12b7   :  { %v1510_v29 = vpop.permute.xlu1 %1509 }
0x12b8   :  { %2486 = vpow2.f32 %v1493_v36  ;;  %v1495_v49 = vmul.f32 1.442695, %v1492_v37  ;;  %v1515_v38 = vsel %vm442_vm4, %v1510_v29, 0 }
0x12b9   :  { %2346 = vmatpush3.bf16.msra.mxu0 %v1515_v38 }
0x12ba   :  { %2488 = vpow2.f32 %v1495_v49  ;;  %2357 = vmatprep.subr.bf16.mxu0 %v2759_v15  ;;  %v2122_v49 = vld [vmem:[#allocation11 + $0x1] ss:$0 sm:$0xff] }
0x12c2   :  { %v2487_v26 = vpop.eup %2486 }
0x12c3   :  { %v1497_v40 = vsel %vm412_vm3, %v2487_v26, 0.0 }
0x12c4   :  { %v2489_v41 = vpop.eup %2488  ;;  %1498 = vadd.xlane.f32.xlu0 %v1497_v40 }
0x12c5   :  { %v1500_v19 = vsel %vm412_vm3, %v2489_v41, 0.0 }
0x12c8   :  { %1501 = vadd.xlane.f32.xlu0 %v1500_v19  ;;  %v2123_v19 = vld [vmem:[#allocation13 + $0x1] ss:$0 sm:$0xff] }
0x12de   :  { %1557 = vrot.lane.b32.xlu0 %v3191_v22, %s2765_s28 }
0x1351   :  { %v1499_v43 = vpop.xlane.xlu0 %1498 }
0x1352   :  { %2490 = vrcp.f32 %v1499_v43 }
0x1355   :  { %v1502_v44 = vpop.xlane.xlu0 %1501 }
0x1356   :  { %2492 = vrcp.f32 %v1502_v44 }
0x1359   :  { %v1558_v45 = vpop.permute.xlu0 %1557 }
0x135a   :  { %v1563_v46 = vsel %vm442_vm4, %v1558_v45, 0 }
0x135b   :  { %2352 = vmatpush3.bf16.msra.mxu1 %v1563_v46 }
0x135c   :  { %v2491_v48 = vpop.eup %2490  ;;  %2365 = vmatprep.subr.bf16.mxu1 %v2759_v15 }
0x135d   :  { %v1505_v50 = vmul.f32 %v2491_v48, %v2487_v26  ;;  %v2440_v48 = vld [vmem:[%s3368_s12 + $0x20] sm:$0xff]  }
0x135f   :  { %v1507_v51 = vpack.c.bf16 %v1505_v50, %v1505_v50  ;;  %v2441_v50 = vld [vmem:[%s3368_s12 + $0x28] sm:$0xff]  }
0x1360   :  { %v2493_v31 = vpop.eup %2492 }
0x1361   :  { %v1506_v32 = vmul.f32 %v2493_v31, %v2489_v41  ;;  %2348 = vmatmul.mubr.msk.bf16.vlgmr.msra.gmra.mrb[40].mxu0 %vm412_vm3, %v1507_v51  ;;  %v2442_v51 = vld [vmem:[%s3368_s12 + $0x30] sm:$0xff]   ;;  %v2443_v31 = vld [vmem:[%s3368_s12 + $0x38] sm:$0xff]  }
0x1362   :  { %2361 = vmatprep.mubr.msk.bf16.mxu0 %vm2760_vm1, %v2759_v15  ;;  %2358 = vmatpush3.bf16.msra.mxu0 %v2436_v52 }
0x1363   :  { %v1508_v22 = vpack.c.bf16 %v1506_v32, %v1506_v32  ;;  %2359 = vmatprep.subr.bf16.mxu0 %v2759_v15  ;;  %v2128_v32 = vld [vmem:[#allocation14 + $0x1] ss:$0 sm:$0xff] }
0x1365   :  { %2354 = vmatmul.mubr.msk.bf16.vlgmr.msra.gmra.mrb[36].mxu1 %vm412_vm3, %v1508_v22 }
0x1366   :  { %2369 = vmatprep.mubr.msk.bf16.mxu1 %vm2760_vm1, %v2759_v15  ;;  %2360 = vmatpush3.bf16.msra.mxu0 %v2437_v53 }
0x1367   :  { %2373 = vmatprep.subr.bf16.mxu0 %v2759_v15 }
0x1434   :  { %v1551_v54 = vpop.f32.mrb[40].mxu0 }
0x1435   :  { %v2349_v55 = vpop.f32.mrb[41].mxu0 }
0x1436   :  { %v1554_v56 = vpop.f32.mrb[42].mxu0 }
0x1437   :  { %v2350_v57 = vpop.f32.mrb[43].mxu0 }
0x1438   :  { %v1599_v58 = vpop.f32.mrb[36].mxu1 }
0x1439   :  { %v2419_v59 = vpack.i.bf16 %v1599_v58, %v1551_v54  ;;  %v2355_v60 = vpop.f32.mrb[37].mxu1 }
0x143a   :  { %v1602_v61 = vpop.f32.mrb[38].mxu1 }
0x143b   :  { %v2356_v62 = vpop.f32.mrb[39].mxu1  ;;  %2420 = vrot.lane.b32.xlu1 %v2419_v59, %s2747_s23 }
0x14ad   :  { %v2421_v42 = vpop.permute.xlu1 %2420 }
0x14ae   :  { %v2423_v63 = vunpack.i.h.bf16 %v2421_v42  ;;  %v2422_v0 = vunpack.i.l.bf16 %v2421_v42 }
0x14b0   :  { %v1614_v1 = vsel %vm316_vm2, %v3249_v8, %v2423_v63  ;;  %v1613_v2 = vsel %vm316_vm2, %v3247_v6, %v2422_v0 }
0x14b1   :  { %v1615_v3 = vpack.c.bf16 %v1614_v1, %v1613_v2 }
0x14b3   :  { %2362 = vmatmul.mubr.msk.bf16.vlgmr.msra.gmra.mrb[44].mxu0 %vm185_vm0, %v1615_v3 }
0x14b4   :  { %2381 = vmatprep.mubr.msk.bf16.mxu0 %vm2760_vm1, %v2759_v15  ;;  %2374 = vmatpush3.bf16.msra.mxu0 %v2440_v48 }
0x14b5   :  { %2375 = vmatprep.subr.bf16.mxu0 %v2759_v15 }
0x14b8   :  { %2376 = vmatpush3.bf16.msra.mxu0 %v2441_v50 }
0x14b9   :  { %2377 = vmatprep.subr.bf16.mxu0 %v2759_v15 }
0x14bc   :  { %2378 = vmatpush3.bf16.msra.mxu0 %v2442_v51 }
0x14bd   :  { %2379 = vmatprep.subr.bf16.mxu0 %v2759_v15 }
0x14c0   :  { %2380 = vmatpush3.bf16.msra.mxu0 %v2443_v31 }
0x1586   :  { %v1678_v5 = vpop.f32.mrb[44].mxu0 }
0x1587   :  { %v1679_v7 = vadd.f32 %v2118_v4, %v1678_v5  ;;  %v2363_v39 = vpop.f32.mrb[45].mxu0 }
0x1588   :  { %v1681_v9 = vpop.f32.mrb[46].mxu0 }
0x1589   :  { %v1682_v12 = vadd.f32 %v2118_v4, %v1681_v9  ;;  %v2364_v13 = vpop.f32.mrb[47].mxu0  ;;  %v1685_v14 = vadd.f32 %v1679_v7, %v3180_v10 }
0x158b   :  { %v1691_v8 = vsel %vm185_vm0, %v1685_v14, 0.0  ;;  %v1686_v16 = vadd.f32 %v1682_v12, %v3182_v11  ;;  %v2438_v11 = vld [vmem:[%s3366_s10 + $0x10] sm:$0xff]  }
0x158c   :  { %1692 = vadd.xlane.f32.xlu1 %v1691_v8  ;;  %2366 = vmatpush3.bf16.msra.mxu1 %v2438_v11 }
0x158d   :  { %v1694_v6 = vsel %vm185_vm0, %v1686_v16, 0.0  ;;  %2367 = vmatprep.subr.bf16.mxu1 %v2759_v15 }
0x158e   :  { %1695 = vadd.xlane.f32.xlu0 %v1694_v6 }
0x1590   :  { %2368 = vmatpush3.bf16.msra.mxu1 %v2439_v30 }
0x1591   :  { %2385 = vmatprep.subr.bf16.mxu1 %v2759_v15 }
0x1619   :  { %v1693_v17 = vpop.xlane.xlu1 %1692 }
0x161a   :  { %v1697_v18 = vmul.f32 0.03125, %v1693_v17 }
0x161b   :  { %v1696_v20 = vpop.xlane.xlu0 %1695 }
0x161c   :  { %v1699_v21 = vsub.f32 %v1685_v14, %v1697_v18  ;;  %v1698_v23 = vmul.f32 0.03125, %v1696_v20  ;;  %v2140_v14 = vld [vmem:[#allocation16 + $0x1] ss:$0 sm:$0xff] }
0x161e   :  { %v1700_v24 = vsub.f32 %v1686_v16, %v1698_v23  ;;  %v1701_v25 = vmul.f32 %v1699_v21, %v1699_v21 }
0x1620   :  { %v1703_v27 = vsel %vm185_vm0, %v1701_v25, 0.0  ;;  %v1702_v28 = vmul.f32 %v1700_v24, %v1700_v24 }
0x1621   :  { %1704 = vadd.xlane.f32.xlu0 %v1703_v27 }
0x1622   :  { %v1706_v10 = vsel %vm185_vm0, %v1702_v28, 0.0 }
0x1623   :  { %1707 = vadd.xlane.f32.xlu1 %v1706_v10 }
0x16ae   :  { %v1705_v33 = vpop.xlane.xlu0 %1704 }
0x16af   :  { %v1709_v34 = vmul.f32 0.03125, %v1705_v33 }
0x16b0   :  { %v1708_v47 = vpop.xlane.xlu1 %1707 }
0x16b1   :  { %v1711_v35 = vadd.f32 1e-12, %v1709_v34  ;;  %v1710_v36 = vmul.f32 0.03125, %v1708_v47 }
0x16b3   :  { %2494 = vrsqrt.f32 %v1711_v35  ;;  %v1712_v37 = vadd.f32 1e-12, %v1710_v36 }
0x16b5   :  { %2496 = vrsqrt.f32 %v1712_v37  ;;  %v2444_v37 = vld [vmem:[%s3372_s16] sm:$0xff]  }
0x16bd   :  { %v2495_v29 = vpop.eup %2494 }
0x16be   :  { %v1715_v38 = vmul.f32 %v2495_v29, %v1699_v21  ;;  %v2445_v29 = vld [vmem:[%s3372_s16 + $0x8] sm:$0xff]  }
0x16bf   :  { %v2497_v26 = vpop.eup %2496 }
0x16c0   :  { %v1723_v40 = vmul.f32 %v2122_v49, %v1715_v38  ;;  %v1716_v41 = vmul.f32 %v2497_v26, %v1700_v24 }
0x16c2   :  { %v1724_v43 = vmul.f32 %v2122_v49, %v1716_v41  ;;  %v1731_v44 = vadd.f32 %v2123_v19, %v1723_v40 }
0x16c4   :  { %v1732_v45 = vadd.f32 %v2123_v19, %v1724_v43 }
0x16c6   :  { %v1733_v46 = vpack.c.bf16 %v1732_v45, %v1731_v44 }
0x16c8   :  { %2370 = vmatmul.mubr.msk.bf16.vlgmr.msra.gmra.mrb[40].mxu1 %vm185_vm0, %v1733_v46 }
0x16c9   :  { %2389 = vmatprep.mubr.msk.bf16.mxu1 %vm2760_vm1, %v2759_v15  ;;  %2386 = vmatpush3.bf16.msra.mxu1 %v2444_v37 }
0x16ca   :  { %2387 = vmatprep.subr.bf16.mxu1 %v2759_v15  ;;  %v2149_v15 = vld [vmem:[%s3371_s15 + $0x1] ss:$0 sm:$0xff] }
0x16cd   :  { %2388 = vmatpush3.bf16.msra.mxu1 %v2445_v29 }
0x179b   :  { %v1796_v22 = vpop.f32.mrb[40].mxu1 }
0x179c   :  { %v1797_v52 = vadd.f32 %v2128_v32, %v1796_v22  ;;  %v2371_v53 = vpop.f32.mrb[41].mxu1 }
0x179d   :  { %v1799_v54 = vpop.f32.mrb[42].mxu1 }
0x179e   :  { %v1805_v55 = vmul.f32 0.044715, %v1797_v52  ;;  %v1800_v56 = vadd.f32 %v2128_v32, %v1799_v54  ;;  %v2372_v57 = vpop.f32.mrb[43].mxu1  ;;  %v1803_v5 = vmul.f32 0.5, %v1797_v52 }
0x17a0   :  { %v1807_v58 = vmul.f32 %v1805_v55, %v1797_v52  ;;  %v1806_v59 = vmul.f32 0.044715, %v1800_v56  ;;  %v1804_v7 = vmul.f32 0.5, %v1800_v56 }
0x17a2   :  { %v1809_v60 = vmul.f32 %v1807_v58, %v1797_v52  ;;  %v1808_v61 = vmul.f32 %v1806_v59, %v1800_v56 }
0x17a4   :  { %v1811_v62 = vadd.f32 %v1809_v60, %v1797_v52  ;;  %v1810_v42 = vmul.f32 %v1808_v61, %v1800_v56  ;;  %v2150_v52 = vld [vmem:[%s3386_s27] ss:$0 sm:$0xff] }
0x17a6   :  { %v1813_v63 = vmul.f32 0.7978846, %v1811_v62  ;;  %v1812_v0 = vadd.f32 %v1810_v42, %v1800_v56 }
0x17a8   :  { %2498 = vtanh.f32 %v1813_v63  ;;  %v1814_v1 = vmul.f32 0.7978846, %v1812_v0 }
0x17aa   :  { %2500 = vtanh.f32 %v1814_v1 }
0x17b2   :  { %v2499_v2 = vpop.eup %2498 }
0x17b3   :  { %v1817_v3 = vadd.f32 1.0, %v2499_v2 }
0x17b4   :  { %v2501_v4 = vpop.eup %2500 }
0x17b5   :  { %v1818_v39 = vadd.f32 1.0, %v2501_v4  ;;  %v1819_v9 = vmul.f32 %v1817_v3, %v1803_v5 }
0x17b7   :  { %v1820_v12 = vmul.f32 %v1818_v39, %v1804_v7 }
0x17b9   :  { %v1821_v13 = vpack.c.bf16 %v1820_v12, %v1819_v9 }
0x17bb   :  { %2382 = vmatmul.mubr.msk.bf16.vlgmr.msra.gmra.mrb[48].mxu0 %vm1004_vm5, %v1821_v13 }
0x188e   :  { %v1900_v8 = vpop.f32.mrb[48].mxu0 }
0x188f   :  { %v1901_v16 = vadd.f32 %v2140_v14, %v1900_v8  ;;  %v2383_v6 = vpop.f32.mrb[49].mxu0 }
0x1890   :  { %v1903_v17 = vpop.f32.mrb[50].mxu0 }
0x1891   :  { %v1904_v18 = vadd.f32 %v2140_v14, %v1903_v17  ;;  %v2384_v20 = vpop.f32.mrb[51].mxu0  ;;  %v1907_v21 = vadd.f32 %v1901_v16, %v1731_v44  ;;  %v2148_v44 = vld [vmem:[%s3370_s14 + $0x1] ss:$0 sm:$0xff]  ;;  %s2766_s14 = smov [#allocation17]  }
0x1892   :  { %s2048_s15 = sshll.u32 %s2766_s14, 4  ;;  %s2049_s15 = int_to_ptr.vmem [resolvable:$true] %s2048_s15 }
0x1893   :  { %v1913_v23 = vsel %vm185_vm0, %v1907_v21, 0.0  ;;  %v1908_v24 = vadd.f32 %v1904_v18, %v1732_v45  ;;  %s2712_s5 = scalar_lea.vmem %s2049_s15, 256  ;;  %p2717_p3 = scmp.lt.s32.totalorder %s2049_s15, %s2049_s15 }
0x1894   :  { %1914 = vadd.xlane.f32.xlu0 %v1913_v23  ;;  %p2713_p2 = scmp.ne.s32.totalorder %s2049_s15, %s2712_s5  ;;  %p2718_p4 = scmp.lt.s32.totalorder %s2712_s5, %s2712_s5 }
0x1895   :  { %v1916_v25 = vsel %vm185_vm0, %v1908_v24, 0.0 }
0x1896   :  { %1917 = vadd.xlane.f32.xlu1 %v1916_v25  ;;  %p2719_p5 = por %p2718_p4, %p2717_p3 }
0x1898   :  { %p2720_p6 = pnand %p2719_p5, %p2713_p2 }
0x1921   :  { %v1915_v27 = vpop.xlane.xlu0 %1914 }
0x1922   :  { %v1919_v28 = vmul.f32 0.03125, %v1915_v27 }
0x1923   :  { %v1918_v10 = vpop.xlane.xlu1 %1917 }
0x1924   :  { %v1921_v11 = vsub.f32 %v1907_v21, %v1919_v28  ;;  %v1920_v30 = vmul.f32 0.03125, %v1918_v10 }
0x1926   :  { %v1922_v33 = vsub.f32 %v1908_v24, %v1920_v30  ;;  %v1923_v34 = vmul.f32 %v1921_v11, %v1921_v11 }
0x1928   :  { %v1925_v47 = vsel %vm185_vm0, %v1923_v34, 0.0  ;;  %v1924_v35 = vmul.f32 %v1922_v33, %v1922_v33 }
0x1929   :  { %1926 = vadd.xlane.f32.xlu0 %v1925_v47 }
0x192a   :  { %v1928_v36 = vsel %vm185_vm0, %v1924_v35, 0.0 }
0x192b   :  { %1929 = vadd.xlane.f32.xlu1 %v1928_v36 }
0x19b6   :  { %v1927_v49 = vpop.xlane.xlu0 %1926 }
0x19b7   :  { %v1931_v38 = vmul.f32 0.03125, %v1927_v49 }
0x19b8   :  { %v1930_v26 = vpop.xlane.xlu1 %1929 }
0x19b9   :  { %v1933_v40 = vadd.f32 1e-12, %v1931_v38  ;;  %v1932_v41 = vmul.f32 0.03125, %v1930_v26 }
0x19bb   :  { %2502 = vrsqrt.f32 %v1933_v40  ;;  %v1934_v19 = vadd.f32 1e-12, %v1932_v41 }
0x19bd   :  { %2504 = vrsqrt.f32 %v1934_v19 }
0x19c5   :  { %v2503_v43 = vpop.eup %2502 }
0x19c6   :  { %v1937_v45 = vmul.f32 %v2503_v43, %v1921_v11 }
0x19c7   :  { %v2505_v46 = vpop.eup %2504 }
0x19c8   :  { %v1945_v48 = vmul.f32 %v2148_v44, %v1937_v45  ;;  %v1938_v50 = vmul.f32 %v2505_v46, %v1922_v33 }
0x19ca   :  { %v1946_v51 = vmul.f32 %v2148_v44, %v1938_v50  ;;  %v1953_v31 = vadd.f32 %v2149_v15, %v1945_v48 }
0x19cc   :  { %v1954_v32 = vadd.f32 %v2149_v15, %v1946_v51 }
0x19ce   :  { %v1955_v22 = vpack.c.bf16 %v1954_v32, %v1953_v31 }
0x19d0   :  { %2390 = vmatmul.mubr.msk.bf16.vlgmr.msra.gmra.mrb[44].mxu1 %vm185_vm0, %v1955_v22 }
0x1aa3   :  { %v2016_v53 = vpop.f32.mrb[44].mxu1 }
0x1aa4   :  { %v2017_v54 = vadd.f32 %v2150_v52, %v2016_v53  ;;  %v2391_v55 = vpop.f32.mrb[45].mxu1 }
0x1aa5   :  { %v2019_v56 = vpop.f32.mrb[46].mxu1 }
0x1aa6   :  { %v2020_v57 = vadd.f32 %v2150_v52, %v2019_v56  ;;  %2023 = vmax.xlane.f32.xlu0 %v2017_v54  ;;  %v2392_v58 = vpop.f32.mrb[47].mxu1 }
0x1aa8   :  { %2025 = vmax.xlane.f32.xlu1 %v2020_v57 }
0x1b33   :  { %v2024_v59 = vpop.xlane.xlu0 %2023 }
0x1b34   :  { %v2027_v60 = vsub.f32 %v2017_v54, %v2024_v59 }
0x1b35   :  { %v2026_v61 = vpop.xlane.xlu1 %2025 }
0x1b36   :  { %v2029_v62 = vmul.f32 1.442695, %v2027_v60  ;;  %v2028_v42 = vsub.f32 %v2020_v57, %v2026_v61 }
0x1b38   :  { %2506 = vpow2.f32 %v2029_v62  ;;  %v2031_v63 = vmul.f32 1.442695, %v2028_v42 }
0x1b3a   :  { %2508 = vpow2.f32 %v2031_v63 }
0x1b42   :  { %v2507_v0 = vpop.eup %2506 }
0x1b43   :  { %2033 = vadd.xlane.f32.xlu0 %v2507_v0 }
0x1b44   :  { %v2509_v1 = vpop.eup %2508 }
0x1b45   :  { %2035 = vadd.xlane.f32.xlu1 %v2509_v1 }
0x1bd0   :  { %v2034_v2 = vpop.xlane.xlu0 %2033 }
0x1bd1   :  { %2510 = vrcp.f32 %v2034_v2 }
0x1bd2   :  { %v2036_v3 = vpop.xlane.xlu1 %2035 }
0x1bd3   :  { %2512 = vrcp.f32 %v2036_v3 }
0x1bdb   :  { %v2511_v4 = vpop.eup %2510 }
0x1bdc   :  { %v2038_v5 = vmul.f32 %v2511_v4, %v2507_v0 }
0x1bdd   :  { %v2513_v7 = vpop.eup %2512 }
0x1bde   :  { %v2040_v39 = vmul.f32 %v2513_v7, %v2509_v1  ;;  %2041 = vst [vmem:[#allocation17] sm:$0xff] %v2038_v5 }
0x1be0   :  { %2042 = vst [vmem:[#allocation17 + $0x8] sm:$0xff] %v2040_v39 }
0x1be1   :  { %2723 = shalt.err (!%p2720_p6)
}
0x1be2   :  { %s3387_s22 = sld [smem:[#allocation28_spill]] }
0x1be8   :  { %s2724_s6 = scalar_lea.hbm %s3387_s22, 256 }
0x1be9   :  { %p2725_p7 = scmp.ne.s32.totalorder %s3387_s22, %s2724_s6  ;;  %p2728_p8 = scmp.lt.u32.totalorder %s2724_s6, %s3387_s22 }
0x1beb   :  { %p2730_p9 = pnand %p2728_p8, %p2725_p7 }
0x1bed   :  { %2733 = shalt.err (!%p2730_p9)
}
0x1bee   :  { %2054 = dma.vmem_to_hbm [thread:$0]  %s2049_s15, 256, %s3387_s22, [#allocation4], %s2753_s11, %s2753_s11, %s2754_s2  }
0x1bef   :  { %2744 = dma.done.wait [#allocation4], 256  }
0x1bf0   :  { %2745 = vsyncadd [#allocation4], 4294967040 }
0x1bf1   :  { %2058 = vsyncpa [#allocation3], 1 }
0x1bf2   :  { %2059 = vsyncpa [#allocation6], 1 }
0x1bf3   :  { %2060 = vsyncpa [#allocation9], 1 }
0x1bf4   :  { %2061 = vsyncpa [#allocation12], 1 }
0x1bf5   :  { %2062 = vsyncpa [#allocation15], 1 }
0x1bf6   :  { %2063 = vsyncpa [#allocation4], 1 }

</bundles_post_ra>
